<compile_context>
chip_gen: v5e
topology: v5e:2x2
jax: 0.10.0
libtpu: 0.0.40
codegen_flags: <defaults>
</compile_context>

<pallas_src>
import functools

import jax
import jax.numpy as jnp
from jax import lax
from jax.experimental import pallas as pl
from jax.experimental.pallas import tpu as pltpu


LANES = 128        # every GEMM N (output features) is padded to 128 lanes
_TM = 256          # M tile for the large (conv1) im2col GEMM
NUM_CLASSES = 10


def _round_up(x, m):
    return (x + m - 1) // m * m


# ----------------------------------------------------------------------------
# Kernel 1: tiled GEMM + bias + tanh   (conv1 / conv2 im2col GEMMs)
# ----------------------------------------------------------------------------
def _gemm_bias_tanh_kernel(x_ref, w_ref, b_ref, o_ref):
    acc = jnp.dot(x_ref[...], w_ref[...], preferred_element_type=jnp.float32)
    acc = acc + b_ref[...]
    o_ref[...] = jnp.tanh(acc).astype(o_ref.dtype)


def gemm_bias_tanh(x, w, b):
    """x: (M, K) f32, w: (K, 128) f32, b: (128,) f32 -> (M, 128) f32.
    K must be a multiple of 8.  N is padded to 128 so output stores are
    lane-dense.  Large M is tiled and the grid axis is marked "parallel"."""
    M, K = x.shape
    Kw, N = w.shape
    assert K == Kw and N == LANES and K % 8 == 0

    if M > _TM:
        tm = _TM
        mp = _round_up(M, tm)
        if mp != M:                       # pad rows; sliced off after the call
            x = jnp.pad(x, ((0, mp - M), (0, 0)))
    else:
        tm = M                            # single full-array block
        mp = M

    out = pl.pallas_call(
        _gemm_bias_tanh_kernel,
        out_shape=jax.ShapeDtypeStruct((mp, N), jnp.float32),
        grid=(mp // tm,),
        in_specs=[
            pl.BlockSpec((tm, K), lambda i: (i, 0)),
            pl.BlockSpec((K, N), lambda i: (0, 0)),
            pl.BlockSpec((1, N), lambda i: (0, 0)),
        ],
        out_specs=pl.BlockSpec((tm, N), lambda i: (i, 0)),
        compiler_params=pltpu.CompilerParams(
            dimension_semantics=("parallel",)),
    )(x, w, b.reshape(1, N))
    return out[:M] if mp != M else out


# ----------------------------------------------------------------------------
# Kernel 2: fused classifier head
#   conv3(=GEMM over flattened 5x5x16 patch) + tanh + fc1 + tanh + fc2 + softmax
#   All intermediates stay in VMEM; only the (B, 128) softmax leaves the chip.
# ----------------------------------------------------------------------------
def _head_kernel(x_ref, w3_ref, b3_ref, w4_ref, b4_ref, w5_ref, b5_ref, o_ref,
                 *, num_classes):
    h = jnp.dot(x_ref[...], w3_ref[...], preferred_element_type=jnp.float32)
    h = jnp.tanh(h + b3_ref[...])                         # conv3 (1x1) + tanh
    h = jnp.dot(h, w4_ref[...], preferred_element_type=jnp.float32)
    h = jnp.tanh(h + b4_ref[...])                         # fc1 + tanh
    logits = jnp.dot(h, w5_ref[...], preferred_element_type=jnp.float32)
    logits = logits + b5_ref[...]                         # fc2

    # softmax over the first `num_classes` lanes only (rest are lane padding)
    lane = lax.broadcasted_iota(jnp.int32, logits.shape, 1)
    valid = lane < num_classes
    logits = jnp.where(valid, logits, jnp.float32(-1e30))
    logits = logits - jnp.max(logits, axis=-1, keepdims=True)
    e = jnp.where(valid, jnp.exp(logits), 0.0)
    inv = pl.reciprocal(jnp.sum(e, axis=-1, keepdims=True), approx=True)
    o_ref[...] = (e * inv).astype(o_ref.dtype)


def head_forward(x_flat, params):
    """x_flat: (B, 400) f32 (flattened 5x5x16 pooled features) -> (B, 10)."""
    B, K3 = x_flat.shape
    assert K3 == 400
    kernel = functools.partial(_head_kernel, num_classes=NUM_CLASSES)
    out = pl.pallas_call(
        kernel,
        out_shape=jax.ShapeDtypeStruct((B, LANES), jnp.float32),
        grid=(1,),
        in_specs=[
            pl.BlockSpec((B, K3), lambda i: (0, 0)),
            pl.BlockSpec((K3, LANES), lambda i: (0, 0)),
            pl.BlockSpec((1, LANES), lambda i: (0, 0)),
            pl.BlockSpec((LANES, LANES), lambda i: (0, 0)),
            pl.BlockSpec((1, LANES), lambda i: (0, 0)),
            pl.BlockSpec((LANES, LANES), lambda i: (0, 0)),
            pl.BlockSpec((1, LANES), lambda i: (0, 0)),
        ],
        out_specs=pl.BlockSpec((B, LANES), lambda i: (0, 0)),
        compiler_params=pltpu.CompilerParams(
            dimension_semantics=("arbitrary",)),
    )(x_flat,
      params["w3"], params["b3"].reshape(1, LANES),
      params["w4"], params["b4"].reshape(1, LANES),
      params["w5"], params["b5"].reshape(1, LANES))
    return out[:, :NUM_CLASSES]


# ----------------------------------------------------------------------------
# Plain-JAX glue: im2col patch extraction (K-padded) and 2x2 average pooling
# ----------------------------------------------------------------------------
def _im2col(x_nhwc, k, pad=0, k_pad=None):
    if pad:
        x_nhwc = jnp.pad(x_nhwc, ((0, 0), (pad, pad), (pad, pad), (0, 0)))
    B, H, W, C = x_nhwc.shape
    Ho, Wo = H - k + 1, W - k + 1
    cols = []
    for di in range(k):
        for dj in range(k):
            cols.append(x_nhwc[:, di:di + Ho, dj:dj + Wo, :])
    patches = jnp.concatenate(cols, axis=-1)              # (B, Ho, Wo, k*k*C)
    patches = patches.reshape(B * Ho * Wo, k * k * C)
    if k_pad is not None and k_pad > k * k * C:
        patches = jnp.pad(patches, ((0, 0), (0, k_pad - k * k * C)))
    return patches, (B, Ho, Wo)


def _avg_pool2(x_nhwc):
    B, H, W, C = x_nhwc.shape
    x = x_nhwc.reshape(B, H // 2, 2, W // 2, 2, C)
    return x.mean(axis=(2, 4))


def conv_tanh(x_nhwc, w, b, k, c_out, pad=0):
    """Conv2d(kernel=k, stride=1, padding=pad) + Tanh via im2col + Pallas GEMM."""
    patches, (B, Ho, Wo) = _im2col(x_nhwc, k, pad=pad, k_pad=w.shape[0])
    out = gemm_bias_tanh(patches, w, b)                   # (B*Ho*Wo, 128)
    return out[:, :c_out].reshape(B, Ho, Wo, c_out)


# ----------------------------------------------------------------------------
# Parameter init (PyTorch-default-style uniform(-1/sqrt(fan_in))).
# Conv weights are stored pre-flattened (kh*kw*c_in, c_out) matching im2col,
# then zero-padded: K to a multiple of 8, N to 128 lanes.
# ----------------------------------------------------------------------------
def init_params(key):
    ks = jax.random.split(key, 10)

    def u(k, shape, fan_in):
        bound = 1.0 / jnp.sqrt(jnp.float32(fan_in))
        return jax.random.uniform(k, shape, jnp.float32, -bound, bound)

    def pad2(w, k_pad, n_pad):
        return jnp.pad(w, ((0, k_pad - w.shape[0]), (0, n_pad - w.shape[1])))

    def pad1(b, n_pad):
        return jnp.pad(b, (0, n_pad - b.shape[0]))

    w1 = u(ks[0], (25, 6), 25);      b1 = u(ks[1], (6,), 25)       # Conv2d(1,6,5,pad=2)
    w2 = u(ks[2], (150, 16), 150);   b2 = u(ks[3], (16,), 150)     # Conv2d(6,16,5)
    w3 = u(ks[4], (400, 120), 400);  b3 = u(ks[5], (120,), 400)    # Conv2d(16,120,5)
    w4 = u(ks[6], (120, 84), 120);   b4 = u(ks[7], (84,), 120)     # Linear(120,84)
    w5 = u(ks[8], (84, 10), 84);     b5 = u(ks[9], (10,), 84)      # Linear(84,10)

    return {
        "w1": pad2(w1, 32, LANES),    "b1": pad1(b1, LANES),
        "w2": pad2(w2, 152, LANES),   "b2": pad1(b2, LANES),
        "w3": pad2(w3, 400, LANES),   "b3": pad1(b3, LANES),
        "w4": pad2(w4, LANES, LANES), "b4": pad1(b4, LANES),
        "w5": pad2(w5, LANES, LANES), "b5": pad1(b5, LANES),
    }


# ----------------------------------------------------------------------------
# Full forward pass (matches torch Lenet5.forward semantics)
# ----------------------------------------------------------------------------
@jax.jit
def lenet5_forward(x_nchw, params):
    x = jnp.transpose(x_nchw, (0, 2, 3, 1))                      # NCHW -> NHWC
    x = conv_tanh(x, params["w1"], params["b1"], 5, 6, pad=2)    # (B,28,28,6)
    x = _avg_pool2(x)                                            # (B,14,14,6)
    x = conv_tanh(x, params["w2"], params["b2"], 5, 16)          # (B,10,10,16)
    x = _avg_pool2(x)                                            # (B,5,5,16)
    x = x.reshape(x.shape[0], 5 * 5 * 16)                        # conv3 patches == flatten
    return head_forward(x, params)                               # fused conv3+fc1+fc2+softmax


if __name__ == "__main__":
    key = jax.random.PRNGKey(0)
    k_params, k_x = jax.random.split(key)

    # LeNet-5's conv stack requires 28x28 inputs (so conv3 yields 1x1x120).
    x = jax.random.normal(k_x, (2, 1, 28, 28), dtype=jnp.float32)
    params = init_params(k_params)

    out = jax.block_until_ready(lenet5_forward(x, params))

    assert out.shape == (2, NUM_CLASSES)
    assert out.dtype == jnp.float32
    assert bool(jnp.all(jnp.isfinite(out)))
    # softmax rows sum to 1 (within the EUP approx-reciprocal tolerance)
    assert bool(jnp.all(jnp.abs(jnp.sum(out, axis=1) - 1.0) < 1e-2))

    print("KERNEL_OK")
</pallas_src>

<mosaic_0001>
module attributes {stable_mosaic.version = 11 : i64} {
  func.func @_gemm_bias_tanh_kernel(%arg0: i32, %arg1: memref<256x32xf32, #tpu.memory_space<vmem>>, %arg2: memref<32x128xf32, #tpu.memory_space<vmem>>, %arg3: memref<1x128xf32, #tpu.memory_space<vmem>>, %arg4: memref<256x128xf32, #tpu.memory_space<vmem>>) attributes {dimension_semantics = [#tpu.dimension_semantics<parallel>], iteration_bounds = array<i64: 7>, scalar_prefetch = 0 : i64, scratch_operands = 0 : i64, tpu.core_type = #tpu.core_type<tc>, window_params = [{transform_indices = @transform_0, window_bounds = array<i64: 256, 32>}, {pipeline_mode = #tpu.pipeline_mode<synchronous>, transform_indices = @transform_1, window_bounds = array<i64: 32, 128>}, {pipeline_mode = #tpu.pipeline_mode<synchronous>, transform_indices = @transform_2, window_bounds = array<i64: 1, 128>}, {transform_indices = @transform_3, window_bounds = array<i64: 256, 128>}]} {
    %c0 = arith.constant 0 : index
    %c0_0 = arith.constant 0 : index
    %0 = vector.load %arg1[%c0, %c0_0] : memref<256x32xf32, #tpu.memory_space<vmem>>, vector<256x32xf32>
    %c0_1 = arith.constant 0 : index
    %c0_2 = arith.constant 0 : index
    %1 = vector.load %arg2[%c0_1, %c0_2] : memref<32x128xf32, #tpu.memory_space<vmem>>, vector<32x128xf32>
    %cst = arith.constant dense<0.000000e+00> : vector<256x128xf32>
    %2 = tpu.matmul %0, %1, %cst {dimension_numbers = #tpu.dot_dimension_numbers<[1], [0], [0], [1], [0, 0, 1, 1], [], []>} : vector<256x32xf32>, vector<32x128xf32>, vector<256x128xf32> -> vector<256x128xf32>
    %c0_3 = arith.constant 0 : index
    %c0_4 = arith.constant 0 : index
    %3 = vector.load %arg3[%c0_3, %c0_4] : memref<1x128xf32, #tpu.memory_space<vmem>>, vector<1x128xf32>
    %4 = vector.broadcast %3 : vector<1x128xf32> to vector<256x128xf32>
    %5 = arith.addf %2, %4 : vector<256x128xf32>
    %6 = math.tanh %5 : vector<256x128xf32>
    %c0_5 = arith.constant 0 : index
    %c0_6 = arith.constant 0 : index
    %7 = vector.load %arg4[%c0_5, %c0_6] : memref<256x128xf32, #tpu.memory_space<vmem>>, vector<256x128xf32>
    tpu.vector_store %arg4[%c0_5, %c0_6], %6 {strides = array<i32>} : memref<256x128xf32, #tpu.memory_space<vmem>>, vector<256x128xf32>,
    return
  }
  func.func @transform_0(%arg0: i32) -> (i32, i32) {
    %c0_i32 = arith.constant 0 : i32
    %c0_i32_0 = arith.constant 0 : i32
    return %arg0, %c0_i32 : i32, i32
  }
  func.func @transform_1(%arg0: i32) -> (i32, i32) {
    %c0_i32 = arith.constant 0 : i32
    %c0_i32_0 = arith.constant 0 : i32
    %c0_i32_1 = arith.constant 0 : i32
    return %c0_i32, %c0_i32_0 : i32, i32
  }
  func.func @transform_2(%arg0: i32) -> (i32, i32) {
    %c0_i32 = arith.constant 0 : i32
    %c0_i32_0 = arith.constant 0 : i32
    %c0_i32_1 = arith.constant 0 : i32
    return %c0_i32, %c0_i32_0 : i32, i32
  }
  func.func @transform_3(%arg0: i32) -> (i32, i32) {
    %c0_i32 = arith.constant 0 : i32
    %c0_i32_0 = arith.constant 0 : i32
    return %arg0, %c0_i32 : i32, i32
  }
}

module attributes {stable_mosaic.version = 11 : i64} {
  func.func @_gemm_bias_tanh_kernel(%arg0: i32, %arg1: memref<200x152xf32, #tpu.memory_space<vmem>>, %arg2: memref<152x128xf32, #tpu.memory_space<vmem>>, %arg3: memref<1x128xf32, #tpu.memory_space<vmem>>, %arg4: memref<200x128xf32, #tpu.memory_space<vmem>>) attributes {dimension_semantics = [#tpu.dimension_semantics<parallel>], iteration_bounds = array<i64: 1>, scalar_prefetch = 0 : i64, scratch_operands = 0 : i64, tpu.core_type = #tpu.core_type<tc>, window_params = [{transform_indices = @transform_0, window_bounds = array<i64: 200, 152>}, {pipeline_mode = #tpu.pipeline_mode<synchronous>, transform_indices = @transform_1, window_bounds = array<i64: 152, 128>}, {pipeline_mode = #tpu.pipeline_mode<synchronous>, transform_indices = @transform_2, window_bounds = array<i64: 1, 128>}, {transform_indices = @transform_3, window_bounds = array<i64: 200, 128>}]} {
    %c0 = arith.constant 0 : index
    %c0_0 = arith.constant 0 : index
    %0 = vector.load %arg1[%c0, %c0_0] : memref<200x152xf32, #tpu.memory_space<vmem>>, vector<200x152xf32>
    %c0_1 = arith.constant 0 : index
    %c0_2 = arith.constant 0 : index
    %1 = vector.load %arg2[%c0_1, %c0_2] : memref<152x128xf32, #tpu.memory_space<vmem>>, vector<152x128xf32>
    %cst = arith.constant dense<0.000000e+00> : vector<200x128xf32>
    %2 = tpu.matmul %0, %1, %cst {dimension_numbers = #tpu.dot_dimension_numbers<[1], [0], [0], [1], [0, 0, 1, 1], [], []>} : vector<200x152xf32>, vector<152x128xf32>, vector<200x128xf32> -> vector<200x128xf32>
    %c0_3 = arith.constant 0 : index
    %c0_4 = arith.constant 0 : index
    %3 = vector.load %arg3[%c0_3, %c0_4] : memref<1x128xf32, #tpu.memory_space<vmem>>, vector<1x128xf32>
    %4 = vector.broadcast %3 : vector<1x128xf32> to vector<200x128xf32>
    %5 = arith.addf %2, %4 : vector<200x128xf32>
    %6 = math.tanh %5 : vector<200x128xf32>
    %c0_5 = arith.constant 0 : index
    %c0_6 = arith.constant 0 : index
    %7 = vector.load %arg4[%c0_5, %c0_6] : memref<200x128xf32, #tpu.memory_space<vmem>>, vector<200x128xf32>
    tpu.vector_store %arg4[%c0_5, %c0_6], %6 {strides = array<i32>} : memref<200x128xf32, #tpu.memory_space<vmem>>, vector<200x128xf32>,
    return
  }
  func.func @transform_0(%arg0: i32) -> (i32, i32) {
    %c0_i32 = arith.constant 0 : i32
    %c0_i32_0 = arith.constant 0 : i32
    return %arg0, %c0_i32 : i32, i32
  }
  func.func @transform_1(%arg0: i32) -> (i32, i32) {
    %c0_i32 = arith.constant 0 : i32
    %c0_i32_0 = arith.constant 0 : i32
    %c0_i32_1 = arith.constant 0 : i32
    return %c0_i32, %c0_i32_0 : i32, i32
  }
  func.func @transform_2(%arg0: i32) -> (i32, i32) {
    %c0_i32 = arith.constant 0 : i32
    %c0_i32_0 = arith.constant 0 : i32
    %c0_i32_1 = arith.constant 0 : i32
    return %c0_i32, %c0_i32_0 : i32, i32
  }
  func.func @transform_3(%arg0: i32) -> (i32, i32) {
    %c0_i32 = arith.constant 0 : i32
    %c0_i32_0 = arith.constant 0 : i32
    return %arg0, %c0_i32 : i32, i32
  }
}

module attributes {stable_mosaic.version = 11 : i64} {
  func.func @_head_kernel(%arg0: i32, %arg1: memref<2x400xf32, #tpu.memory_space<vmem>>, %arg2: memref<400x128xf32, #tpu.memory_space<vmem>>, %arg3: memref<1x128xf32, #tpu.memory_space<vmem>>, %arg4: memref<128x128xf32, #tpu.memory_space<vmem>>, %arg5: memref<1x128xf32, #tpu.memory_space<vmem>>, %arg6: memref<128x128xf32, #tpu.memory_space<vmem>>, %arg7: memref<1x128xf32, #tpu.memory_space<vmem>>, %arg8: memref<2x128xf32, #tpu.memory_space<vmem>>) attributes {dimension_semantics = [#tpu.dimension_semantics<arbitrary>], iteration_bounds = array<i64: 1>, scalar_prefetch = 0 : i64, scratch_operands = 0 : i64, tpu.core_type = #tpu.core_type<tc>, window_params = [{pipeline_mode = #tpu.pipeline_mode<synchronous>, transform_indices = @transform_0, window_bounds = array<i64: 2, 400>}, {pipeline_mode = #tpu.pipeline_mode<synchronous>, transform_indices = @transform_1, window_bounds = array<i64: 400, 128>}, {pipeline_mode = #tpu.pipeline_mode<synchronous>, transform_indices = @transform_2, window_bounds = array<i64: 1, 128>}, {pipeline_mode = #tpu.pipeline_mode<synchronous>, transform_indices = @transform_3, window_bounds = array<i64: 128, 128>}, {pipeline_mode = #tpu.pipeline_mode<synchronous>, transform_indices = @transform_4, window_bounds = array<i64: 1, 128>}, {pipeline_mode = #tpu.pipeline_mode<synchronous>, transform_indices = @transform_5, window_bounds = array<i64: 128, 128>}, {pipeline_mode = #tpu.pipeline_mode<synchronous>, transform_indices = @transform_6, window_bounds = array<i64: 1, 128>}, {pipeline_mode = #tpu.pipeline_mode<synchronous>, transform_indices = @transform_7, window_bounds = array<i64: 2, 128>}]} {
    %c0 = arith.constant 0 : index
    %c0_0 = arith.constant 0 : index
    %0 = vector.load %arg1[%c0, %c0_0] : memref<2x400xf32, #tpu.memory_space<vmem>>, vector<2x400xf32>
    %c0_1 = arith.constant 0 : index
    %c0_2 = arith.constant 0 : index
    %1 = vector.load %arg2[%c0_1, %c0_2] : memref<400x128xf32, #tpu.memory_space<vmem>>, vector<400x128xf32>
    %cst = arith.constant dense<0.000000e+00> : vector<2x128xf32>
    %2 = tpu.matmul %0, %1, %cst {dimension_numbers = #tpu.dot_dimension_numbers<[1], [0], [0], [1], [0, 0, 1, 1], [], []>} : vector<2x400xf32>, vector<400x128xf32>, vector<2x128xf32> -> vector<2x128xf32>
    %c0_3 = arith.constant 0 : index
    %c0_4 = arith.constant 0 : index
    %3 = vector.load %arg3[%c0_3, %c0_4] : memref<1x128xf32, #tpu.memory_space<vmem>>, vector<1x128xf32>
    %4 = vector.broadcast %3 : vector<1x128xf32> to vector<2x128xf32>
    %5 = arith.addf %2, %4 : vector<2x128xf32>
    %6 = math.tanh %5 : vector<2x128xf32>
    %c0_5 = arith.constant 0 : index
    %c0_6 = arith.constant 0 : index
    %7 = vector.load %arg4[%c0_5, %c0_6] : memref<128x128xf32, #tpu.memory_space<vmem>>, vector<128x128xf32>
    %cst_7 = arith.constant dense<0.000000e+00> : vector<2x128xf32>
    %8 = tpu.matmul %6, %7, %cst_7 {dimension_numbers = #tpu.dot_dimension_numbers<[1], [0], [0], [1], [0, 0, 1, 1], [], []>} : vector<2x128xf32>, vector<128x128xf32>, vector<2x128xf32> -> vector<2x128xf32>
    %c0_8 = arith.constant 0 : index
    %c0_9 = arith.constant 0 : index
    %9 = vector.load %arg5[%c0_8, %c0_9] : memref<1x128xf32, #tpu.memory_space<vmem>>, vector<1x128xf32>
    %10 = vector.broadcast %9 : vector<1x128xf32> to vector<2x128xf32>
    %11 = arith.addf %8, %10 : vector<2x128xf32>
    %12 = math.tanh %11 : vector<2x128xf32>
    %c0_10 = arith.constant 0 : index
    %c0_11 = arith.constant 0 : index
    %13 = vector.load %arg6[%c0_10, %c0_11] : memref<128x128xf32, #tpu.memory_space<vmem>>, vector<128x128xf32>
    %cst_12 = arith.constant dense<0.000000e+00> : vector<2x128xf32>
    %14 = tpu.matmul %12, %13, %cst_12 {dimension_numbers = #tpu.dot_dimension_numbers<[1], [0], [0], [1], [0, 0, 1, 1], [], []>} : vector<2x128xf32>, vector<128x128xf32>, vector<2x128xf32> -> vector<2x128xf32>
    %c0_13 = arith.constant 0 : index
    %c0_14 = arith.constant 0 : index
    %15 = vector.load %arg7[%c0_13, %c0_14] : memref<1x128xf32, #tpu.memory_space<vmem>>, vector<1x128xf32>
    %16 = vector.broadcast %15 : vector<1x128xf32> to vector<2x128xf32>
    %17 = arith.addf %14, %16 : vector<2x128xf32>
    %18 = tpu.iota {dimensions = array<i32: 1>} : vector<2x128xi32>
    %c10_i32 = arith.constant 10 : i32
    %19 = vector.broadcast %c10_i32 : i32 to vector<2x128xi32>
    %20 = arith.cmpi slt, %18, %19 : vector<2x128xi32>
    %cst_15 = arith.constant -1.000000e+30 : f32
    %21 = vector.broadcast %cst_15 : f32 to vector<2x128xf32>
    %22 = arith.select %20, %17, %21 : vector<2x128xi1>, vector<2x128xf32>
    %cst_16 = arith.constant dense<0xFF800000> : vector<2xf32>
    %23 = vector.multi_reduction <maximumf>, %22, %cst_16 [1] : vector<2x128xf32> to vector<2xf32>
    %24 = vector.shape_cast %23 : vector<2xf32> to vector<2x1xf32>
    %25 = vector.broadcast %24 : vector<2x1xf32> to vector<2x128xf32>
    %26 = arith.subf %22, %25 : vector<2x128xf32>
    %27 = math.exp %26 : vector<2x128xf32>
    %cst_17 = arith.constant 0.000000e+00 : f32
    %28 = vector.broadcast %cst_17 : f32 to vector<2x128xf32>
    %29 = arith.select %20, %27, %28 : vector<2x128xi1>, vector<2x128xf32>
    %cst_18 = arith.constant dense<0.000000e+00> : vector<2xf32>
    %30 = vector.multi_reduction <add>, %29, %cst_18 [1] : vector<2x128xf32> to vector<2xf32>
    %31 = vector.shape_cast %30 : vector<2xf32> to vector<2x1xf32>
    %32 = tpu.reciprocal %31 {approx = true} : vector<2x1xf32> -> vector<2x1xf32>
    %33 = vector.broadcast %32 : vector<2x1xf32> to vector<2x128xf32>
    %34 = arith.mulf %29, %33 : vector<2x128xf32>
    %c0_19 = arith.constant 0 : index
    %c0_20 = arith.constant 0 : index
    %35 = vector.load %arg8[%c0_19, %c0_20] : memref<2x128xf32, #tpu.memory_space<vmem>>, vector<2x128xf32>
    tpu.vector_store %arg8[%c0_19, %c0_20], %34 {strides = array<i32>} : memref<2x128xf32, #tpu.memory_space<vmem>>, vector<2x128xf32>,
    return
  }
  func.func @transform_0(%arg0: i32) -> (i32, i32) {
    %c0_i32 = arith.constant 0 : i32
    %c0_i32_0 = arith.constant 0 : i32
    %c0_i32_1 = arith.constant 0 : i32
    return %c0_i32, %c0_i32_0 : i32, i32
  }
  func.func @transform_1(%arg0: i32) -> (i32, i32) {
    %c0_i32 = arith.constant 0 : i32
    %c0_i32_0 = arith.constant 0 : i32
    %c0_i32_1 = arith.constant 0 : i32
    return %c0_i32, %c0_i32_0 : i32, i32
  }
  func.func @transform_2(%arg0: i32) -> (i32, i32) {
    %c0_i32 = arith.constant 0 : i32
    %c0_i32_0 = arith.constant 0 : i32
    %c0_i32_1 = arith.constant 0 : i32
    return %c0_i32, %c0_i32_0 : i32, i32
  }
  func.func @transform_3(%arg0: i32) -> (i32, i32) {
    %c0_i32 = arith.constant 0 : i32
    %c0_i32_0 = arith.constant 0 : i32
    %c0_i32_1 = arith.constant 0 : i32
    return %c0_i32, %c0_i32_0 : i32, i32
  }
  func.func @transform_4(%arg0: i32) -> (i32, i32) {
    %c0_i32 = arith.constant 0 : i32
    %c0_i32_0 = arith.constant 0 : i32
    %c0_i32_1 = arith.constant 0 : i32
    return %c0_i32, %c0_i32_0 : i32, i32
  }
  func.func @transform_5(%arg0: i32) -> (i32, i32) {
    %c0_i32 = arith.constant 0 : i32
    %c0_i32_0 = arith.constant 0 : i32
    %c0_i32_1 = arith.constant 0 : i32
    return %c0_i32, %c0_i32_0 : i32, i32
  }
  func.func @transform_6(%arg0: i32) -> (i32, i32) {
    %c0_i32 = arith.constant 0 : i32
    %c0_i32_0 = arith.constant 0 : i32
    %c0_i32_1 = arith.constant 0 : i32
    return %c0_i32, %c0_i32_0 : i32, i32
  }
  func.func @transform_7(%arg0: i32) -> (i32, i32) {
    %c0_i32 = arith.constant 0 : i32
    %c0_i32_0 = arith.constant 0 : i32
    %c0_i32_1 = arith.constant 0 : i32
    return %c0_i32, %c0_i32_0 : i32, i32
  }
}

</mosaic_0001>

<bundles_post_ra>
// kernel: lenet5_forward.3
= control target key start
LH: loop header
LB: loop body
LE: loop exit
PB: predicated region body
PF: predicated region fallthrough
CT: control target
= control target key end

     0   :  { %s700_s12 = smov 0   ;;  %s873_s0 = inlined_call_operand.vmem [shape: f32[1792,32], index: 0, kind: input, shape index: {}]   ;;  %s874_s1 = inlined_call_operand.vmem [shape: f32[32,128], index: 1, kind: input, shape index: {}]   ;;  %s875_s2 = inlined_call_operand.vmem [shape: f32[1,128], index: 2, kind: input, shape index: {}]   ;;  %s876_s3 = inlined_call_operand.vmem [shape: f32[1792,128], index: 3, kind: output, shape index: {}]  }
   0x1 LB: > { %s544_s13 = sadd.s32 4294967295, %s678_s12   ;;  %p548_p0 = scmp.ge.s32.totalorder %s678_s12, 1  ;;  %s678_s12 = sphi %s700_s12, %s13_s12  }
   0x2   : > { %p138_p1 = scmp.lt.s32.totalorder %s678_s12, 8 }
   0x4   : > { %p139_p2 = pnand %p548_p0, %p138_p1 }
   0x5   : > { %s549_s18 = sshll.u32 (!%p139_p2), %s544_s13, 5 }
   0x6   : > { %142 = sbr.rel (%p139_p2) target bundleno = 218 (0xda), region = 32  ;;  %p163_p3 = scmp.lt.s32.totalorder (!%p139_p2), %s549_s18, 223 }
   0xb   : > { %v209_v0 = vld [vmem:[%s874_s1 + $0x18] sm:$0xff]  ;;  %v208_v1 = vld [vmem:[%s874_s1 + $0x10] sm:$0xff]  ;;  %v207_v2 = vld [vmem:[%s874_s1 + $0x8] sm:$0xff]  ;;  %s878_s18 = smov (!%p163_p3, %s549_s18), 223  ;;  %vm214_vm0 = vcmask 261120  }
   0xc   : > { %588 = vmatpush.msra.mxu2 %v209_v0  ;;  %589 = vmatpush.msra.mxu3 %v209_v0  ;;  %v206_v3 = vld [vmem:[%s874_s1] sm:$0xff]  ;;  %s550_s23 = sshll.u32 %s878_s18, 3 }
   0xd   : > { %323 = vmatpush.msra.mxu0 %v209_v0  ;;  %587 = vmatpush.msra.mxu1 %v209_v0  ;;  %s728_s26 = scalar_lea.vmem %s873_s0, %s550_s23  ;;  %v797_v36 = vld [vmem:[%s875_s2] ss:$0 sm:$0xff]  ;;  %s808_s4 = scalar_lea.vmem %s876_s3, %s550_s23 }
   0xe   : > { %591 = vmatpush.msra.mxu2 %v208_v1  ;;  %592 = vmatpush.msra.mxu3 %v208_v1  ;;  %v190_v4 = vld [vmem:[%s728_s26 + $0x80] sm:$0xff]  ;;  %v191_v8 = vld [vmem:[%s728_s26 + $0x88] sm:$0xff]  ;;  %v192_v12 = vld [vmem:[%s728_s26 + $0x90] sm:$0xff] }
   0xf   : > { %324 = vmatpush.msra.mxu0 %v208_v1  ;;  %590 = vmatpush.msra.mxu1 %v208_v1  ;;  %v198_v5 = vld [vmem:[%s728_s26 + $0xc0] sm:$0xff]  ;;  %v199_v9 = vld [vmem:[%s728_s26 + $0xc8] sm:$0xff]  ;;  %v200_v13 = vld [vmem:[%s728_s26 + $0xd0] sm:$0xff] }
  0x10   : > { %594 = vmatpush.msra.mxu2 %v207_v2  ;;  %595 = vmatpush.msra.mxu3 %v207_v2  ;;  %v174_v6 = vld [vmem:[%s728_s26] sm:$0xff]  ;;  %v175_v10 = vld [vmem:[%s728_s26 + $0x8] sm:$0xff]  ;;  %v176_v14 = vld [vmem:[%s728_s26 + $0x10] sm:$0xff] }
  0x11   : > { %325 = vmatpush.msra.mxu0 %v207_v2  ;;  %593 = vmatpush.msra.mxu1 %v207_v2  ;;  %v182_v7 = vld [vmem:[%s728_s26 + $0x40] sm:$0xff]  ;;  %v183_v11 = vld [vmem:[%s728_s26 + $0x48] sm:$0xff]  ;;  %v184_v15 = vld [vmem:[%s728_s26 + $0x50] sm:$0xff] }
  0x12   : > { %597 = vmatpush.msra.mxu2 %v206_v3  ;;  %598 = vmatpush.msra.mxu3 %v206_v3  ;;  %v193_v16 = vld [vmem:[%s728_s26 + $0x98] sm:$0xff]  ;;  %v194_v20 = vld [vmem:[%s728_s26 + $0xa0] sm:$0xff]  ;;  %v195_v24 = vld [vmem:[%s728_s26 + $0xa8] sm:$0xff] }
  0x13   : > { %569 = vmatmul.msk.f32.vlgmr.msra.gmra.mxu2 %vm214_vm0, %v190_v4  ;;  %577 = vmatmul.msk.f32.vlgmr.msra.gmra.mxu3 %vm214_vm0, %v198_v5  ;;  %v201_v17 = vld [vmem:[%s728_s26 + $0xd8] sm:$0xff]  ;;  %v202_v21 = vld [vmem:[%s728_s26 + $0xe0] sm:$0xff]  ;;  %v203_v25 = vld [vmem:[%s728_s26 + $0xe8] sm:$0xff] }
  0x14   : > { %326 = vmatpush.msra.mxu0 %v206_v3  ;;  %596 = vmatpush.msra.mxu1 %v206_v3  ;;  %v177_v18 = vld [vmem:[%s728_s26 + $0x18] sm:$0xff]  ;;  %v178_v22 = vld [vmem:[%s728_s26 + $0x20] sm:$0xff]  ;;  %v179_v26 = vld [vmem:[%s728_s26 + $0x28] sm:$0xff] }
  0x15   : > { %553 = vmatmul.msk.f32.vlgmr.msra.gmra.mxu0 %vm214_vm0, %v174_v6  ;;  %561 = vmatmul.msk.f32.vlgmr.msra.gmra.mxu1 %vm214_vm0, %v182_v7  ;;  %v185_v19 = vld [vmem:[%s728_s26 + $0x58] sm:$0xff]  ;;  %v186_v23 = vld [vmem:[%s728_s26 + $0x60] sm:$0xff]  ;;  %v187_v27 = vld [vmem:[%s728_s26 + $0x68] sm:$0xff] }
  0x16   : > { %v196_v28 = vld [vmem:[%s728_s26 + $0xb0] sm:$0xff]  ;;  %v197_v32 = vld [vmem:[%s728_s26 + $0xb8] sm:$0xff] }
  0x17   : > { %v204_v29 = vld [vmem:[%s728_s26 + $0xf0] sm:$0xff]  ;;  %v205_v33 = vld [vmem:[%s728_s26 + $0xf8] sm:$0xff] }
  0x18   : > { %v180_v30 = vld [vmem:[%s728_s26 + $0x30] sm:$0xff]  ;;  %v181_v34 = vld [vmem:[%s728_s26 + $0x38] sm:$0xff] }
  0x19   : > { %v188_v31 = vld [vmem:[%s728_s26 + $0x70] sm:$0xff]  ;;  %v189_v35 = vld [vmem:[%s728_s26 + $0x78] sm:$0xff] }
  0x1b   : > { %570 = vmatmul.msk.f32.gmra.mxu2 %vm214_vm0, %v191_v8  ;;  %578 = vmatmul.msk.f32.gmra.mxu3 %vm214_vm0, %v199_v9 }
  0x1d   : > { %554 = vmatmul.msk.f32.gmra.mxu0 %vm214_vm0, %v175_v10  ;;  %562 = vmatmul.msk.f32.gmra.mxu1 %vm214_vm0, %v183_v11 }
  0x23   : > { %571 = vmatmul.msk.f32.gmra.mxu2 %vm214_vm0, %v192_v12  ;;  %579 = vmatmul.msk.f32.gmra.mxu3 %vm214_vm0, %v200_v13 }
  0x25   : > { %555 = vmatmul.msk.f32.gmra.mxu0 %vm214_vm0, %v176_v14  ;;  %563 = vmatmul.msk.f32.gmra.mxu1 %vm214_vm0, %v184_v15 }
  0x2b   : > { %572 = vmatmul.msk.f32.gmra.mxu2 %vm214_vm0, %v193_v16  ;;  %580 = vmatmul.msk.f32.gmra.mxu3 %vm214_vm0, %v201_v17 }
  0x2d   : > { %556 = vmatmul.msk.f32.gmra.mxu0 %vm214_vm0, %v177_v18  ;;  %564 = vmatmul.msk.f32.gmra.mxu1 %vm214_vm0, %v185_v19 }
  0x33   : > { %573 = vmatmul.msk.f32.gmra.mxu2 %vm214_vm0, %v194_v20  ;;  %581 = vmatmul.msk.f32.gmra.mxu3 %vm214_vm0, %v202_v21 }
  0x35   : > { %557 = vmatmul.msk.f32.gmra.mxu0 %vm214_vm0, %v178_v22  ;;  %565 = vmatmul.msk.f32.gmra.mxu1 %vm214_vm0, %v186_v23 }
  0x3b   : > { %574 = vmatmul.msk.f32.gmra.mxu2 %vm214_vm0, %v195_v24  ;;  %582 = vmatmul.msk.f32.gmra.mxu3 %vm214_vm0, %v203_v25 }
  0x3d   : > { %558 = vmatmul.msk.f32.gmra.mxu0 %vm214_vm0, %v179_v26  ;;  %566 = vmatmul.msk.f32.gmra.mxu1 %vm214_vm0, %v187_v27 }
  0x43   : > { %575 = vmatmul.msk.f32.gmra.mxu2 %vm214_vm0, %v196_v28  ;;  %583 = vmatmul.msk.f32.gmra.mxu3 %vm214_vm0, %v204_v29 }
  0x45   : > { %559 = vmatmul.msk.f32.gmra.mxu0 %vm214_vm0, %v180_v30  ;;  %567 = vmatmul.msk.f32.gmra.mxu1 %vm214_vm0, %v188_v31 }
  0x4b   : > { %576 = vmatmul.msk.f32.gmra.mxu2 %vm214_vm0, %v197_v32  ;;  %584 = vmatmul.msk.f32.gmra.mxu3 %vm214_vm0, %v205_v33 }
  0x4d   : > { %560 = vmatmul.msk.f32.gmra.mxu0 %vm214_vm0, %v181_v34  ;;  %568 = vmatmul.msk.f32.gmra.mxu1 %vm214_vm0, %v189_v35 }
  0x92   : > { %v328_v37 = vpop.f32.mrf.mxu0  ;;  %v352_v38 = vpop.f32.mrf.mxu1 }
  0x93   : > { %v329_v39 = vadd.f32 %v797_v36, %v328_v37  ;;  %v353_v40 = vadd.f32 %v797_v36, %v352_v38 }
  0x95   : > { %608 = vtanh.f32 %v329_v39 }
  0x96   : > { %610 = vtanh.f32 %v353_v40  ;;  %v376_v41 = vpop.f32.mrf.mxu2  ;;  %v400_v42 = vpop.f32.mrf.mxu3 }
  0x97   : > { %v377_v43 = vadd.f32 %v797_v36, %v376_v41  ;;  %v401_v44 = vadd.f32 %v797_v36, %v400_v42 }
  0x99   : > { %612 = vtanh.f32 %v377_v43 }
  0x9a   : > { %614 = vtanh.f32 %v401_v44  ;;  %v331_v45 = vpop.f32.mrf.mxu0  ;;  %v355_v46 = vpop.f32.mrf.mxu1 }
  0x9b   : > { %v609_v47 = vpop.eup %608  ;;  %v332_v48 = vadd.f32 %v797_v36, %v331_v45  ;;  %v356_v49 = vadd.f32 %v797_v36, %v355_v46 }
  0x9c   : > { %v611_v50 = vpop.eup %610  ;;  %456 = vst [vmem:[%s808_s4] sm:$0xff] %v609_v47 }
  0x9d   : > { %464 = vst [vmem:[%s808_s4 + $0x40] sm:$0xff] %v611_v50  ;;  %616 = vtanh.f32 %v332_v48 }
  0x9e   : > { %618 = vtanh.f32 %v356_v49  ;;  %v379_v51 = vpop.f32.mrf.mxu2  ;;  %v403_v52 = vpop.f32.mrf.mxu3 }
  0x9f   : > { %v613_v53 = vpop.eup %612  ;;  %v380_v54 = vadd.f32 %v797_v36, %v379_v51  ;;  %v404_v55 = vadd.f32 %v797_v36, %v403_v52 }
  0xa0   : > { %v615_v56 = vpop.eup %614  ;;  %472 = vst [vmem:[%s808_s4 + $0x80] sm:$0xff] %v613_v53 }
  0xa1   : > { %480 = vst [vmem:[%s808_s4 + $0xc0] sm:$0xff] %v615_v56  ;;  %620 = vtanh.f32 %v380_v54 }
  0xa2   : > { %622 = vtanh.f32 %v404_v55  ;;  %v334_v57 = vpop.f32.mrf.mxu0  ;;  %v358_v58 = vpop.f32.mrf.mxu1 }
  0xa3   : > { %v617_v59 = vpop.eup %616  ;;  %v335_v60 = vadd.f32 %v797_v36, %v334_v57  ;;  %v359_v61 = vadd.f32 %v797_v36, %v358_v58 }
  0xa4   : > { %v619_v62 = vpop.eup %618  ;;  %457 = vst [vmem:[%s808_s4 + $0x8] sm:$0xff] %v617_v59 }
  0xa5   : > { %465 = vst [vmem:[%s808_s4 + $0x48] sm:$0xff] %v619_v62  ;;  %624 = vtanh.f32 %v335_v60 }
  0xa6   : > { %626 = vtanh.f32 %v359_v61  ;;  %v382_v63 = vpop.f32.mrf.mxu2  ;;  %v406_v0 = vpop.f32.mrf.mxu3 }
  0xa7   : > { %v621_v1 = vpop.eup %620  ;;  %v383_v2 = vadd.f32 %v797_v36, %v382_v63  ;;  %v407_v3 = vadd.f32 %v797_v36, %v406_v0 }
  0xa8   : > { %v623_v4 = vpop.eup %622  ;;  %473 = vst [vmem:[%s808_s4 + $0x88] sm:$0xff] %v621_v1 }
  0xa9   : > { %481 = vst [vmem:[%s808_s4 + $0xc8] sm:$0xff] %v623_v4  ;;  %628 = vtanh.f32 %v383_v2 }
  0xaa   : > { %630 = vtanh.f32 %v407_v3  ;;  %v337_v5 = vpop.f32.mrf.mxu0  ;;  %v361_v6 = vpop.f32.mrf.mxu1 }
  0xab   : > { %v625_v7 = vpop.eup %624  ;;  %v338_v8 = vadd.f32 %v797_v36, %v337_v5  ;;  %v362_v9 = vadd.f32 %v797_v36, %v361_v6 }
  0xac   : > { %v627_v10 = vpop.eup %626  ;;  %458 = vst [vmem:[%s808_s4 + $0x10] sm:$0xff] %v625_v7 }
  0xad   : > { %466 = vst [vmem:[%s808_s4 + $0x50] sm:$0xff] %v627_v10  ;;  %632 = vtanh.f32 %v338_v8 }
  0xae   : > { %634 = vtanh.f32 %v362_v9  ;;  %v385_v11 = vpop.f32.mrf.mxu2  ;;  %v409_v12 = vpop.f32.mrf.mxu3 }
  0xaf   : > { %v629_v13 = vpop.eup %628  ;;  %v386_v14 = vadd.f32 %v797_v36, %v385_v11  ;;  %v410_v15 = vadd.f32 %v797_v36, %v409_v12 }
  0xb0   : > { %v631_v16 = vpop.eup %630  ;;  %474 = vst [vmem:[%s808_s4 + $0x90] sm:$0xff] %v629_v13 }
  0xb1   : > { %482 = vst [vmem:[%s808_s4 + $0xd0] sm:$0xff] %v631_v16  ;;  %636 = vtanh.f32 %v386_v14 }
  0xb2   : > { %638 = vtanh.f32 %v410_v15  ;;  %v340_v17 = vpop.f32.mrf.mxu0  ;;  %v364_v18 = vpop.f32.mrf.mxu1 }
  0xb3   : > { %v633_v19 = vpop.eup %632  ;;  %v341_v20 = vadd.f32 %v797_v36, %v340_v17  ;;  %v365_v21 = vadd.f32 %v797_v36, %v364_v18 }
  0xb4   : > { %v635_v22 = vpop.eup %634  ;;  %459 = vst [vmem:[%s808_s4 + $0x18] sm:$0xff] %v633_v19 }
  0xb5   : > { %467 = vst [vmem:[%s808_s4 + $0x58] sm:$0xff] %v635_v22  ;;  %640 = vtanh.f32 %v341_v20 }
  0xb6   : > { %642 = vtanh.f32 %v365_v21  ;;  %v388_v23 = vpop.f32.mrf.mxu2  ;;  %v412_v24 = vpop.f32.mrf.mxu3 }
  0xb7   : > { %v637_v25 = vpop.eup %636  ;;  %v389_v26 = vadd.f32 %v797_v36, %v388_v23  ;;  %v413_v27 = vadd.f32 %v797_v36, %v412_v24 }
  0xb8   : > { %v639_v28 = vpop.eup %638  ;;  %475 = vst [vmem:[%s808_s4 + $0x98] sm:$0xff] %v637_v25 }
  0xb9   : > { %483 = vst [vmem:[%s808_s4 + $0xd8] sm:$0xff] %v639_v28  ;;  %644 = vtanh.f32 %v389_v26 }
  0xba   : > { %646 = vtanh.f32 %v413_v27  ;;  %v343_v29 = vpop.f32.mrf.mxu0  ;;  %v367_v30 = vpop.f32.mrf.mxu1 }
  0xbb   : > { %v641_v31 = vpop.eup %640  ;;  %v344_v32 = vadd.f32 %v797_v36, %v343_v29  ;;  %v368_v33 = vadd.f32 %v797_v36, %v367_v30 }
  0xbc   : > { %v643_v34 = vpop.eup %642  ;;  %460 = vst [vmem:[%s808_s4 + $0x20] sm:$0xff] %v641_v31 }
  0xbd   : > { %468 = vst [vmem:[%s808_s4 + $0x60] sm:$0xff] %v643_v34  ;;  %648 = vtanh.f32 %v344_v32 }
  0xbe   : > { %650 = vtanh.f32 %v368_v33  ;;  %v391_v35 = vpop.f32.mrf.mxu2  ;;  %v415_v37 = vpop.f32.mrf.mxu3 }
  0xbf   : > { %v645_v38 = vpop.eup %644  ;;  %v392_v39 = vadd.f32 %v797_v36, %v391_v35  ;;  %v416_v40 = vadd.f32 %v797_v36, %v415_v37 }
  0xc0   : > { %v647_v41 = vpop.eup %646  ;;  %476 = vst [vmem:[%s808_s4 + $0xa0] sm:$0xff] %v645_v38 }
  0xc1   : > { %484 = vst [vmem:[%s808_s4 + $0xe0] sm:$0xff] %v647_v41  ;;  %652 = vtanh.f32 %v392_v39 }
  0xc2   : > { %654 = vtanh.f32 %v416_v40  ;;  %v346_v42 = vpop.f32.mrf.mxu0  ;;  %v370_v43 = vpop.f32.mrf.mxu1 }
  0xc3   : > { %v649_v44 = vpop.eup %648  ;;  %v347_v45 = vadd.f32 %v797_v36, %v346_v42  ;;  %v371_v46 = vadd.f32 %v797_v36, %v370_v43 }
  0xc4   : > { %v651_v47 = vpop.eup %650  ;;  %461 = vst [vmem:[%s808_s4 + $0x28] sm:$0xff] %v649_v44 }
  0xc5   : > { %469 = vst [vmem:[%s808_s4 + $0x68] sm:$0xff] %v651_v47  ;;  %656 = vtanh.f32 %v347_v45 }
  0xc6   : > { %658 = vtanh.f32 %v371_v46  ;;  %v394_v48 = vpop.f32.mrf.mxu2  ;;  %v418_v49 = vpop.f32.mrf.mxu3 }
  0xc7   : > { %v653_v50 = vpop.eup %652  ;;  %v395_v51 = vadd.f32 %v797_v36, %v394_v48  ;;  %v419_v52 = vadd.f32 %v797_v36, %v418_v49 }
  0xc8   : > { %v655_v53 = vpop.eup %654  ;;  %477 = vst [vmem:[%s808_s4 + $0xa8] sm:$0xff] %v653_v50 }
  0xc9   : > { %485 = vst [vmem:[%s808_s4 + $0xe8] sm:$0xff] %v655_v53  ;;  %660 = vtanh.f32 %v395_v51 }
  0xca   : > { %662 = vtanh.f32 %v419_v52  ;;  %v349_v54 = vpop.f32.mrf.mxu0  ;;  %v373_v55 = vpop.f32.mrf.mxu1 }
  0xcb   : > { %v657_v56 = vpop.eup %656  ;;  %v350_v57 = vadd.f32 %v797_v36, %v349_v54  ;;  %v374_v58 = vadd.f32 %v797_v36, %v373_v55 }
  0xcc   : > { %v659_v59 = vpop.eup %658  ;;  %462 = vst [vmem:[%s808_s4 + $0x30] sm:$0xff] %v657_v56 }
  0xcd   : > { %470 = vst [vmem:[%s808_s4 + $0x70] sm:$0xff] %v659_v59  ;;  %664 = vtanh.f32 %v350_v57 }
  0xce   : > { %666 = vtanh.f32 %v374_v58  ;;  %v397_v60 = vpop.f32.mrf.mxu2  ;;  %v421_v61 = vpop.f32.mrf.mxu3 }
  0xcf   : > { %v661_v62 = vpop.eup %660  ;;  %v398_v63 = vadd.f32 %v797_v36, %v397_v60  ;;  %v422_v0 = vadd.f32 %v797_v36, %v421_v61 }
  0xd0   : > { %v663_v1 = vpop.eup %662  ;;  %478 = vst [vmem:[%s808_s4 + $0xb0] sm:$0xff] %v661_v62 }
  0xd1   : > { %486 = vst [vmem:[%s808_s4 + $0xf0] sm:$0xff] %v663_v1  ;;  %668 = vtanh.f32 %v398_v63 }
  0xd2   : > { %670 = vtanh.f32 %v422_v0 }
  0xd3   : > { %v665_v2 = vpop.eup %664 }
  0xd4   : > { %v667_v3 = vpop.eup %666  ;;  %463 = vst [vmem:[%s808_s4 + $0x38] sm:$0xff] %v665_v2 }
  0xd5   : > { %471 = vst [vmem:[%s808_s4 + $0x78] sm:$0xff] %v667_v3 }
  0xd7   : > { %v669_v4 = vpop.eup %668 }
  0xd8   : > { %v671_v5 = vpop.eup %670  ;;  %479 = vst [vmem:[%s808_s4 + $0xb8] sm:$0xff] %v669_v4 }
  0xd9   : > { %487 = vst [vmem:[%s808_s4 + $0xf8] sm:$0xff] %v671_v5 }
  0xda PF: > { %s13_s12 = sadd.s32 1, %s678_s12  }
  0xdb   : > { %p10_p4 = scmp.ge.s32.totalorder %s13_s12, 9  }
  0xdd   :  { %12 = sbr.rel (!%p10_p4) target bundleno = 1 (0x1), region = 62 }

// kernel: lenet5_forward.4
= control target key start
LH: loop header
LB: loop body
LE: loop exit
PB: predicated region body
PF: predicated region fallthrough
CT: control target
= control target key end

     0   :  { %vm87_vm0 = vcmask 195584   ;;  %s902_s1 = inlined_call_operand.vmem [shape: f32[152,128], index: 1, kind: input, shape index: {}]   ;;  %s903_s0 = inlined_call_operand.vmem [shape: f32[200,152], index: 0, kind: input, shape index: {}]   ;;  %s904_s2 = inlined_call_operand.vmem [shape: f32[1,128], index: 2, kind: input, shape index: {}]   ;;  %s905_s3 = inlined_call_operand.vmem [shape: f32[200,128], index: 3, kind: output, shape index: {}]  }
   0x1   :  { %v79_v0 = vld [vmem:[%s902_s1 + $0x78] sm:$0xff]  ;;  %v538_v1 = vld [vmem:[%s902_s1 + $0x90] sm:$0xff]  ;;  %v546_v3 = vld [vmem:[%s902_s1 + $0x88] sm:$0xff] }
   0x2   :  { %v78_v2 = vld [vmem:[%s902_s1 + $0x70] sm:$0xff]  ;;  %163 = vmatpush.msra.mxu0 %v79_v0  ;;  %426 = vmatpush.msra.mxu2 %v79_v0  ;;  %v77_v4 = vld [vmem:[%s902_s1 + $0x68] sm:$0xff]  ;;  %v555_v5 = vld [vmem:[%s902_s1 + $0x80] sm:$0xff] }
   0x3   :  { %427 = vmatpush.msra.mxu3 %v79_v0  ;;  %268 = vmatpush.msra.mxu1 %v538_v1  ;;  %v15_v6 = vld [vmem:[%s903_s0 + $0x8] sm:$0xff]  ;;  %v76_v7 = vld [vmem:[%s902_s1 + $0x60] sm:$0xff]  ;;  %v75_v8 = vld [vmem:[%s902_s1 + $0x58] sm:$0xff] }
   0x4   :  { %164 = vmatpush.msra.mxu0 %v78_v2  ;;  %428 = vmatpush.msra.mxu2 %v78_v2  ;;  %v74_v9 = vld [vmem:[%s902_s1 + $0x50] sm:$0xff]  ;;  %v73_v10 = vld [vmem:[%s902_s1 + $0x48] sm:$0xff]  ;;  %v17_v11 = vld [vmem:[%s903_s0 + $0x18] sm:$0xff] }
   0x5   :  { %429 = vmatpush.msra.mxu3 %v78_v2  ;;  %269 = vmatpush.msra.mxu1 %v546_v3  ;;  %v72_v12 = vld [vmem:[%s902_s1 + $0x40] sm:$0xff]  ;;  %v71_v13 = vld [vmem:[%s902_s1 + $0x38] sm:$0xff]  ;;  %v70_v14 = vld [vmem:[%s902_s1 + $0x30] sm:$0xff] }
   0x6   :  { %165 = vmatpush.msra.mxu0 %v77_v4  ;;  %430 = vmatpush.msra.mxu2 %v77_v4  ;;  %v69_v15 = vld [vmem:[%s902_s1 + $0x28] sm:$0xff]  ;;  %v68_v17 = vld [vmem:[%s902_s1 + $0x20] sm:$0xff]  ;;  %v67_v18 = vld [vmem:[%s902_s1 + $0x18] sm:$0xff] }
   0x7   :  { %431 = vmatpush.msra.mxu3 %v77_v4  ;;  %270 = vmatpush.msra.mxu1 %v555_v5  ;;  %v19_v16 = vld [vmem:[%s903_s0 + $0x28] sm:$0xff]  ;;  %v66_v19 = vld [vmem:[%s902_s1 + $0x10] sm:$0xff]  ;;  %v21_v21 = vld [vmem:[%s903_s0 + $0x38] sm:$0xff] }
   0x8   :  { %401 = vmatmul.msk.f32.vlgmr.msra.gmra.mxu1 %vm87_vm0, %v15_v6  ;;  %166 = vmatpush.msra.mxu0 %v76_v7  ;;  %v65_v20 = vld [vmem:[%s902_s1 + $0x8] sm:$0xff]  ;;  %v64_v22 = vld [vmem:[%s902_s1] sm:$0xff]  ;;  %v36_v24 = vld [vmem:[%s903_s0 + $0xb0] sm:$0xff] }
   0x9   :  { %432 = vmatpush.msra.mxu2 %v76_v7  ;;  %433 = vmatpush.msra.mxu3 %v76_v7  ;;  %v14_v23 = vld [vmem:[%s903_s0] sm:$0xff]  ;;  %v60_v25 = vld [vmem:[%s903_s0 + $0x170] sm:$0xff]  ;;  %v23_v26 = vld [vmem:[%s903_s0 + $0x48] sm:$0xff] }
   0xa   :  { %167 = vmatpush.msra.mxu0 %v75_v8  ;;  %v16_v27 = vld [vmem:[%s903_s0 + $0x10] sm:$0xff]  ;;  %v38_v28 = vld [vmem:[%s903_s0 + $0xc0] sm:$0xff]  ;;  %v25_v30 = vld [vmem:[%s903_s0 + $0x58] sm:$0xff] }
   0xb   :  { %434 = vmatpush.msra.mxu2 %v75_v8  ;;  %435 = vmatpush.msra.mxu3 %v75_v8  ;;  %v62_v29 = vld [vmem:[%s903_s0 + $0x180] sm:$0xff]  ;;  %v40_v32 = vld [vmem:[%s903_s0 + $0xd0] sm:$0xff]  ;;  %v45_v33 = vld [vmem:[%s903_s0 + $0xf8] sm:$0xff] }
   0xc   :  { %168 = vmatpush.msra.mxu0 %v74_v9  ;;  %v18_v31 = vld [vmem:[%s903_s0 + $0x20] sm:$0xff]  ;;  %v27_v34 = vld [vmem:[%s903_s0 + $0x68] sm:$0xff]  ;;  %v20_v35 = vld [vmem:[%s903_s0 + $0x30] sm:$0xff] }
   0xd   :  { %436 = vmatpush.msra.mxu2 %v74_v9  ;;  %437 = vmatpush.msra.mxu3 %v74_v9  ;;  %v42_v36 = vld [vmem:[%s903_s0 + $0xe0] sm:$0xff]  ;;  %v47_v37 = vld [vmem:[%s903_s0 + $0x108] sm:$0xff]  ;;  %v29_v38 = vld [vmem:[%s903_s0 + $0x78] sm:$0xff] }
   0xe   :  { %169 = vmatpush.msra.mxu0 %v73_v10  ;;  %v22_v39 = vld [vmem:[%s903_s0 + $0x40] sm:$0xff]  ;;  %v44_v40 = vld [vmem:[%s903_s0 + $0xf0] sm:$0xff]  ;;  %v49_v41 = vld [vmem:[%s903_s0 + $0x118] sm:$0xff] }
   0xf   :  { %438 = vmatpush.msra.mxu2 %v73_v10  ;;  %439 = vmatpush.msra.mxu3 %v73_v10  ;;  %v31_v42 = vld [vmem:[%s903_s0 + $0x88] sm:$0xff]  ;;  %v24_v43 = vld [vmem:[%s903_s0 + $0x50] sm:$0xff]  ;;  %v46_v44 = vld [vmem:[%s903_s0 + $0x100] sm:$0xff] }
  0x10   :  { %402 = vmatmul.msk.f32.gmra.mxu1 %vm87_vm0, %v17_v11  ;;  %170 = vmatpush.msra.mxu0 %v72_v12  ;;  %v51_v45 = vld [vmem:[%s903_s0 + $0x128] sm:$0xff]  ;;  %v33_v46 = vld [vmem:[%s903_s0 + $0x98] sm:$0xff]  ;;  %v26_v47 = vld [vmem:[%s903_s0 + $0x60] sm:$0xff] }
  0x11   :  { %440 = vmatpush.msra.mxu2 %v72_v12  ;;  %441 = vmatpush.msra.mxu3 %v72_v12  ;;  %v48_v48 = vld [vmem:[%s903_s0 + $0x110] sm:$0xff]  ;;  %v53_v49 = vld [vmem:[%s903_s0 + $0x138] sm:$0xff]  ;;  %v35_v50 = vld [vmem:[%s903_s0 + $0xa8] sm:$0xff] }
  0x12   :  { %171 = vmatpush.msra.mxu0 %v71_v13  ;;  %v28_v51 = vld [vmem:[%s903_s0 + $0x70] sm:$0xff]  ;;  %v50_v52 = vld [vmem:[%s903_s0 + $0x120] sm:$0xff]  ;;  %v55_v53 = vld [vmem:[%s903_s0 + $0x148] sm:$0xff] }
  0x13   :  { %442 = vmatpush.msra.mxu2 %v71_v13  ;;  %443 = vmatpush.msra.mxu3 %v71_v13  ;;  %v37_v54 = vld [vmem:[%s903_s0 + $0xb8] sm:$0xff]  ;;  %v30_v55 = vld [vmem:[%s903_s0 + $0x80] sm:$0xff]  ;;  %v52_v56 = vld [vmem:[%s903_s0 + $0x130] sm:$0xff] }
  0x14   :  { %172 = vmatpush.msra.mxu0 %v70_v14  ;;  %v57_v57 = vld [vmem:[%s903_s0 + $0x158] sm:$0xff]  ;;  %v39_v58 = vld [vmem:[%s903_s0 + $0xc8] sm:$0xff]  ;;  %v32_v59 = vld [vmem:[%s903_s0 + $0x90] sm:$0xff] }
  0x15   :  { %444 = vmatpush.msra.mxu2 %v70_v14  ;;  %445 = vmatpush.msra.mxu3 %v70_v14  ;;  %v54_v60 = vld [vmem:[%s903_s0 + $0x140] sm:$0xff]  ;;  %v59_v61 = vld [vmem:[%s903_s0 + $0x168] sm:$0xff]  ;;  %v41_v62 = vld [vmem:[%s903_s0 + $0xd8] sm:$0xff] }
  0x16   :  { %173 = vmatpush.msra.mxu0 %v69_v15  ;;  %v34_v63 = vld [vmem:[%s903_s0 + $0xa0] sm:$0xff]  ;;  %v56_v0 = vld [vmem:[%s903_s0 + $0x150] sm:$0xff]  ;;  %v43_v2 = vld [vmem:[%s903_s0 + $0xe8] sm:$0xff] }
  0x17   :  { %446 = vmatpush.msra.mxu2 %v69_v15  ;;  %447 = vmatpush.msra.mxu3 %v69_v15  ;;  %v63_v4 = vld [vmem:[%s903_s0 + $0x188] sm:$0xff]  ;;  %v779_v8 = vld [vmem:[%s904_s2] ss:$0 sm:$0xff] }
  0x18   :  { %403 = vmatmul.msk.f32.gmra.mxu1 %vm87_vm0, %v19_v16  ;;  %174 = vmatpush.msra.mxu0 %v68_v17 }
  0x19   :  { %448 = vmatpush.msra.mxu2 %v68_v17  ;;  %449 = vmatpush.msra.mxu3 %v68_v17 }
  0x1a   :  { %175 = vmatpush.msra.mxu0 %v67_v18 }
  0x1b   :  { %450 = vmatpush.msra.mxu2 %v67_v18  ;;  %451 = vmatpush.msra.mxu3 %v67_v18 }
  0x1c   :  { %176 = vmatpush.msra.mxu0 %v66_v19 }
  0x1d   :  { %452 = vmatpush.msra.mxu2 %v66_v19  ;;  %453 = vmatpush.msra.mxu3 %v66_v19 }
  0x1e   :  { %177 = vmatpush.msra.mxu0 %v65_v20 }
  0x1f   :  { %454 = vmatpush.msra.mxu2 %v65_v20  ;;  %455 = vmatpush.msra.mxu3 %v65_v20 }
  0x20   :  { %404 = vmatmul.msk.f32.gmra.mxu1 %vm87_vm0, %v21_v21  ;;  %178 = vmatpush.msra.mxu0 %v64_v22 }
  0x21   :  { %456 = vmatpush.msra.mxu2 %v64_v22  ;;  %457 = vmatpush.msra.mxu3 %v64_v22 }
  0x22   :  { %179 = vmatmul.f32.vlgmr.msra.gmra.mxu0 %v14_v23  ;;  %212 = vmatmul.f32.vlgmr.msra.gmra.mxu2 %v36_v24 }
  0x23   :  { %248 = vmatmul.f32.vlgmr.msra.gmra.mxu3 %v60_v25 }
  0x24   :  { %458 = vmatpush.msrb.mxu3 %v538_v1  ;;  %v61_v1 = vld [vmem:[%s903_s0 + $0x178] sm:$0xff] }
  0x26   :  { %459 = vmatpush.msrb.mxu3 %v546_v3  ;;  %v58_v3 = vld [vmem:[%s903_s0 + $0x160] sm:$0xff] }
  0x28   :  { %405 = vmatmul.msk.f32.gmra.mxu1 %vm87_vm0, %v23_v26  ;;  %460 = vmatpush.msrb.mxu3 %v555_v5 }
  0x2a   :  { %182 = vmatmul.f32.gmra.mxu0 %v16_v27  ;;  %215 = vmatmul.f32.gmra.mxu2 %v38_v28 }
  0x2b   :  { %251 = vmatmul.f32.gmra.mxu3 %v62_v29 }
  0x30   :  { %406 = vmatmul.msk.f32.gmra.mxu1 %vm87_vm0, %v25_v30 }
  0x32   :  { %185 = vmatmul.f32.gmra.mxu0 %v18_v31  ;;  %218 = vmatmul.f32.gmra.mxu2 %v40_v32 }
  0x33   :  { %416 = vmatmul.msk.f32.vlgmr.msrb.gmra.mxu3 %vm87_vm0, %v45_v33 }
  0x38   :  { %407 = vmatmul.msk.f32.gmra.mxu1 %vm87_vm0, %v27_v34 }
  0x3a   :  { %188 = vmatmul.f32.gmra.mxu0 %v20_v35  ;;  %221 = vmatmul.f32.gmra.mxu2 %v42_v36 }
  0x3b   :  { %417 = vmatmul.msk.f32.gmra.mxu3 %vm87_vm0, %v47_v37 }
  0x40   :  { %408 = vmatmul.msk.f32.gmra.mxu1 %vm87_vm0, %v29_v38 }
  0x42   :  { %191 = vmatmul.f32.gmra.mxu0 %v22_v39  ;;  %224 = vmatmul.f32.gmra.mxu2 %v44_v40 }
  0x43   :  { %418 = vmatmul.msk.f32.gmra.mxu3 %vm87_vm0, %v49_v41 }
  0x48   :  { %409 = vmatmul.msk.f32.gmra.mxu1 %vm87_vm0, %v31_v42 }
  0x4a   :  { %194 = vmatmul.f32.gmra.mxu0 %v24_v43  ;;  %227 = vmatmul.f32.gmra.mxu2 %v46_v44 }
  0x4b   :  { %419 = vmatmul.msk.f32.gmra.mxu3 %vm87_vm0, %v51_v45 }
  0x50   :  { %410 = vmatmul.msk.f32.gmra.mxu1 %vm87_vm0, %v33_v46 }
  0x52   :  { %197 = vmatmul.f32.gmra.mxu0 %v26_v47  ;;  %230 = vmatmul.f32.gmra.mxu2 %v48_v48 }
  0x53   :  { %420 = vmatmul.msk.f32.gmra.mxu3 %vm87_vm0, %v53_v49 }
  0x58   :  { %411 = vmatmul.msk.f32.gmra.mxu1 %vm87_vm0, %v35_v50 }
  0x5a   :  { %200 = vmatmul.f32.gmra.mxu0 %v28_v51  ;;  %233 = vmatmul.f32.gmra.mxu2 %v50_v52 }
  0x5b   :  { %421 = vmatmul.msk.f32.gmra.mxu3 %vm87_vm0, %v55_v53 }
  0x60   :  { %412 = vmatmul.msk.f32.gmra.mxu1 %vm87_vm0, %v37_v54 }
  0x62   :  { %203 = vmatmul.f32.gmra.mxu0 %v30_v55  ;;  %236 = vmatmul.f32.gmra.mxu2 %v52_v56 }
  0x63   :  { %422 = vmatmul.msk.f32.gmra.mxu3 %vm87_vm0, %v57_v57 }
  0x68   :  { %413 = vmatmul.msk.f32.gmra.mxu1 %vm87_vm0, %v39_v58 }
  0x6a   :  { %206 = vmatmul.f32.gmra.mxu0 %v32_v59  ;;  %239 = vmatmul.f32.gmra.mxu2 %v54_v60 }
  0x6b   :  { %423 = vmatmul.msk.f32.gmra.mxu3 %vm87_vm0, %v59_v61 }
  0x70   :  { %414 = vmatmul.msk.f32.gmra.mxu1 %vm87_vm0, %v41_v62 }
  0x72   :  { %209 = vmatmul.f32.gmra.mxu0 %v34_v63  ;;  %242 = vmatmul.f32.gmra.mxu2 %v56_v0 }
  0x73   :  { %424 = vmatmul.msk.f32.gmra.mxu3 %vm87_vm0, %v61_v1 }
  0x78   :  { %415 = vmatmul.msk.f32.gmra.mxu1 %vm87_vm0, %v43_v2 }
  0x7a   :  { %245 = vmatmul.f32.gmra.mxu2 %v58_v3 }
  0x7b   :  { %425 = vmatmul.msk.f32.gmra.mxu3 %vm87_vm0, %v63_v4 }
  0x85   :  { %v272_v5 = vpop.f32.mrf.mxu1 }
  0x8d   :  { %v275_v6 = vpop.f32.mrf.mxu1 }
  0x95   :  { %v278_v7 = vpop.f32.mrf.mxu1 }
  0x9d   :  { %v281_v9 = vpop.f32.mrf.mxu1 }
  0x9f   :  { %v180_v10 = vpop.f32.mrf.mxu0 }
  0xa0   :  { %v181_v11 = vadd.f32 %v779_v8, %v180_v10 }
  0xa2   :  { %v273_v12 = vadd.f32 %v272_v5, %v181_v11 }
  0xa4   :  { %462 = vtanh.f32 %v273_v12 }
  0xa5   :  { %v782_v13 = vpop.f32.mrf.mxu2  ;;  %v284_v14 = vpop.f32.mrf.mxu1 }
  0xa6   :  { %v784_v15 = vpop.f32.mrf.mxu3 }
  0xa7   :  { %v183_v16 = vpop.f32.mrf.mxu0 }
  0xa8   :  { %v184_v17 = vadd.f32 %v779_v8, %v183_v16 }
  0xaa   :  { %v463_v18 = vpop.eup %462  ;;  %v276_v19 = vadd.f32 %v275_v6, %v184_v17  ;;  %v214_v6 = vadd.f32 %v779_v8, %v782_v13 }
  0xab   :  { %372 = vst [vmem:[%s905_s3] sm:$0xff] %v463_v18 }
  0xac   :  { %464 = vtanh.f32 %v276_v19 }
  0xad   :  { %v790_v20 = vpop.f32.mrf.mxu2  ;;  %v287_v21 = vpop.f32.mrf.mxu1 }
  0xae   :  { %v792_v22 = vpop.f32.mrf.mxu3 }
  0xaf   :  { %v186_v23 = vpop.f32.mrf.mxu0 }
  0xb0   :  { %v187_v24 = vadd.f32 %v779_v8, %v186_v23 }
  0xb2   :  { %v465_v25 = vpop.eup %464  ;;  %v279_v26 = vadd.f32 %v278_v7, %v187_v24 }
  0xb3   :  { %373 = vst [vmem:[%s905_s3 + $0x8] sm:$0xff] %v465_v25 }
  0xb4   :  { %466 = vtanh.f32 %v279_v26 }
  0xb5   :  { %v798_v27 = vpop.f32.mrf.mxu2  ;;  %v290_v28 = vpop.f32.mrf.mxu1 }
  0xb6   :  { %v317_v29 = vpop.f32.mrf.mxu3 }
  0xb7   :  { %v189_v30 = vpop.f32.mrf.mxu0 }
  0xb8   :  { %v190_v31 = vadd.f32 %v779_v8, %v189_v30 }
  0xba   :  { %v467_v32 = vpop.eup %466  ;;  %v282_v33 = vadd.f32 %v281_v9, %v190_v31 }
  0xbb   :  { %374 = vst [vmem:[%s905_s3 + $0x10] sm:$0xff] %v467_v32 }
  0xbc   :  { %468 = vtanh.f32 %v282_v33 }
  0xbd   :  { %v804_v34 = vpop.f32.mrf.mxu2  ;;  %v293_v35 = vpop.f32.mrf.mxu1 }
  0xbe   :  { %v320_v36 = vpop.f32.mrf.mxu3 }
  0xbf   :  { %v192_v37 = vpop.f32.mrf.mxu0 }
  0xc0   :  { %v193_v38 = vadd.f32 %v779_v8, %v192_v37 }
  0xc2   :  { %v469_v39 = vpop.eup %468  ;;  %v285_v40 = vadd.f32 %v284_v14, %v193_v38 }
  0xc3   :  { %375 = vst [vmem:[%s905_s3 + $0x18] sm:$0xff] %v469_v39 }
  0xc4   :  { %470 = vtanh.f32 %v285_v40 }
  0xc5   :  { %v225_v41 = vpop.f32.mrf.mxu2  ;;  %v296_v42 = vpop.f32.mrf.mxu1 }
  0xc6   :  { %v226_v43 = vadd.f32 %v779_v8, %v225_v41  ;;  %v323_v44 = vpop.f32.mrf.mxu3 }
  0xc7   :  { %v195_v45 = vpop.f32.mrf.mxu0 }
  0xc8   :  { %v318_v46 = vadd.f32 %v317_v29, %v226_v43  ;;  %v196_v47 = vadd.f32 %v779_v8, %v195_v45 }
  0xca   :  { %v471_v48 = vpop.eup %470  ;;  %472 = vtanh.f32 %v318_v46  ;;  %v288_v49 = vadd.f32 %v287_v21, %v196_v47  ;;  %v217_v21 = vadd.f32 %v779_v8, %v790_v20 }
  0xcb   :  { %376 = vst [vmem:[%s905_s3 + $0x20] sm:$0xff] %v471_v48  ;;  %v223_v48 = vadd.f32 %v779_v8, %v804_v34  ;;  %v253_v34 = vadd.f32 %v779_v8, %v792_v22 }
  0xcc   :  { %474 = vtanh.f32 %v288_v49  ;;  %v250_v49 = vadd.f32 %v779_v8, %v784_v15 }
  0xcd   :  { %v228_v50 = vpop.f32.mrf.mxu2  ;;  %v299_v51 = vpop.f32.mrf.mxu1 }
  0xce   :  { %v229_v52 = vadd.f32 %v779_v8, %v228_v50  ;;  %v326_v53 = vpop.f32.mrf.mxu3 }
  0xcf   :  { %v198_v54 = vpop.f32.mrf.mxu0 }
  0xd0   :  { %v473_v55 = vpop.eup %472  ;;  %v321_v56 = vadd.f32 %v320_v36, %v229_v52  ;;  %v199_v57 = vadd.f32 %v779_v8, %v198_v54  ;;  %v220_v36 = vadd.f32 %v779_v8, %v798_v27 }
  0xd1   :  { %387 = vst [vmem:[%s905_s3 + $0x78] sm:$0xff] %v473_v55 }
  0xd2   :  { %v475_v58 = vpop.eup %474  ;;  %476 = vtanh.f32 %v321_v56  ;;  %v291_v59 = vadd.f32 %v290_v28, %v199_v57 }
  0xd3   :  { %377 = vst [vmem:[%s905_s3 + $0x28] sm:$0xff] %v475_v58 }
  0xd4   :  { %478 = vtanh.f32 %v291_v59 }
  0xd5   :  { %v231_v60 = vpop.f32.mrf.mxu2  ;;  %v823_v61 = vpop.f32.mrf.mxu1 }
  0xd6   :  { %v232_v62 = vadd.f32 %v779_v8, %v231_v60  ;;  %v329_v63 = vpop.f32.mrf.mxu3 }
  0xd7   :  { %v201_v0 = vpop.f32.mrf.mxu0 }
  0xd8   :  { %v477_v1 = vpop.eup %476  ;;  %v324_v2 = vadd.f32 %v323_v44, %v232_v62  ;;  %v202_v3 = vadd.f32 %v779_v8, %v201_v0 }
  0xd9   :  { %388 = vst [vmem:[%s905_s3 + $0x80] sm:$0xff] %v477_v1 }
  0xda   :  { %v479_v4 = vpop.eup %478  ;;  %480 = vtanh.f32 %v324_v2  ;;  %v294_v5 = vadd.f32 %v293_v35, %v202_v3 }
  0xdb   :  { %378 = vst [vmem:[%s905_s3 + $0x30] sm:$0xff] %v479_v4 }
  0xdc   :  { %482 = vtanh.f32 %v294_v5 }
  0xdd   :  { %v234_v7 = vpop.f32.mrf.mxu2  ;;  %v305_v9 = vpop.f32.mrf.mxu1 }
  0xde   :  { %v235_v10 = vadd.f32 %v779_v8, %v234_v7  ;;  %v306_v11 = vadd.f32 %v305_v9, %v214_v6  ;;  %v332_v12 = vpop.f32.mrf.mxu3 }
  0xdf   :  { %v204_v14 = vpop.f32.mrf.mxu0 }
  0xe0   :  { %v481_v16 = vpop.eup %480  ;;  %v327_v17 = vadd.f32 %v326_v53, %v235_v10  ;;  %484 = vtanh.f32 %v306_v11  ;;  %v205_v18 = vadd.f32 %v779_v8, %v204_v14 }
  0xe1   :  { %389 = vst [vmem:[%s905_s3 + $0x88] sm:$0xff] %v481_v16 }
  0xe2   :  { %v483_v19 = vpop.eup %482  ;;  %486 = vtanh.f32 %v327_v17  ;;  %v297_v13 = vadd.f32 %v296_v42, %v205_v18 }
  0xe3   :  { %379 = vst [vmem:[%s905_s3 + $0x38] sm:$0xff] %v483_v19 }
  0xe4   :  { %488 = vtanh.f32 %v297_v13 }
  0xe5   :  { %v237_v23 = vpop.f32.mrf.mxu2  ;;  %v308_v24 = vpop.f32.mrf.mxu1 }
  0xe6   :  { %v485_v25 = vpop.eup %484  ;;  %v238_v26 = vadd.f32 %v779_v8, %v237_v23  ;;  %v309_v28 = vadd.f32 %v308_v24, %v217_v21  ;;  %v335_v29 = vpop.f32.mrf.mxu3 }
  0xe7   :  { %383 = vst [vmem:[%s905_s3 + $0x58] sm:$0xff] %v485_v25  ;;  %v207_v30 = vpop.f32.mrf.mxu0 }
  0xe8   :  { %v487_v31 = vpop.eup %486  ;;  %v330_v32 = vadd.f32 %v329_v63, %v238_v26  ;;  %490 = vtanh.f32 %v309_v28  ;;  %v208_v33 = vadd.f32 %v779_v8, %v207_v30 }
  0xe9   :  { %390 = vst [vmem:[%s905_s3 + $0x90] sm:$0xff] %v487_v31 }
  0xea   :  { %v489_v20 = vpop.eup %488  ;;  %492 = vtanh.f32 %v330_v32  ;;  %v300_v35 = vadd.f32 %v299_v51, %v208_v33 }
  0xeb   :  { %380 = vst [vmem:[%s905_s3 + $0x40] sm:$0xff] %v489_v20 }
  0xec   :  { %494 = vtanh.f32 %v300_v35 }
  0xed   :  { %v240_v37 = vpop.f32.mrf.mxu2  ;;  %v311_v38 = vpop.f32.mrf.mxu1 }
  0xee   :  { %v491_v39 = vpop.eup %490  ;;  %v241_v40 = vadd.f32 %v779_v8, %v240_v37  ;;  %v312_v41 = vadd.f32 %v311_v38, %v220_v36  ;;  %v338_v42 = vpop.f32.mrf.mxu3 }
  0xef   :  { %384 = vst [vmem:[%s905_s3 + $0x60] sm:$0xff] %v491_v39  ;;  %v210_v43 = vpop.f32.mrf.mxu0 }
  0xf0   :  { %v493_v44 = vpop.eup %492  ;;  %v333_v45 = vadd.f32 %v332_v12, %v241_v40  ;;  %496 = vtanh.f32 %v312_v41  ;;  %v211_v46 = vadd.f32 %v779_v8, %v210_v43 }
  0xf1   :  { %391 = vst [vmem:[%s905_s3 + $0x98] sm:$0xff] %v493_v44 }
  0xf2   :  { %v495_v27 = vpop.eup %494  ;;  %498 = vtanh.f32 %v333_v45  ;;  %v303_v47 = vadd.f32 %v823_v61, %v211_v46 }
  0xf3   :  { %381 = vst [vmem:[%s905_s3 + $0x48] sm:$0xff] %v495_v27 }
  0xf4   :  { %500 = vtanh.f32 %v303_v47 }
  0xf5   :  { %v243_v50 = vpop.f32.mrf.mxu2  ;;  %v314_v51 = vpop.f32.mrf.mxu1 }
  0xf6   :  { %v497_v52 = vpop.eup %496  ;;  %v244_v53 = vadd.f32 %v779_v8, %v243_v50  ;;  %v315_v54 = vadd.f32 %v314_v51, %v223_v48  ;;  %v341_v55 = vpop.f32.mrf.mxu3 }
  0xf7   :  { %385 = vst [vmem:[%s905_s3 + $0x68] sm:$0xff] %v497_v52  ;;  %v342_v56 = vadd.f32 %v341_v55, %v250_v49 }
  0xf8   :  { %v499_v57 = vpop.eup %498  ;;  %v336_v58 = vadd.f32 %v335_v29, %v244_v53  ;;  %502 = vtanh.f32 %v315_v54 }
  0xf9   :  { %392 = vst [vmem:[%s905_s3 + $0xa0] sm:$0xff] %v499_v57  ;;  %504 = vtanh.f32 %v342_v56 }
  0xfa   :  { %v501_v15 = vpop.eup %500  ;;  %506 = vtanh.f32 %v336_v58 }
  0xfb   :  { %382 = vst [vmem:[%s905_s3 + $0x50] sm:$0xff] %v501_v15 }
  0xfd   :  { %v246_v59 = vpop.f32.mrf.mxu2 }
  0xfe   :  { %v503_v60 = vpop.eup %502  ;;  %v247_v61 = vadd.f32 %v779_v8, %v246_v59  ;;  %v344_v62 = vpop.f32.mrf.mxu3 }
  0xff   :  { %v505_v63 = vpop.eup %504  ;;  %386 = vst [vmem:[%s905_s3 + $0x70] sm:$0xff] %v503_v60  ;;  %v345_v0 = vadd.f32 %v344_v62, %v253_v34 }
 0x100   :  { %v507_v1 = vpop.eup %506  ;;  %395 = vst [vmem:[%s905_s3 + $0xb8] sm:$0xff] %v505_v63  ;;  %v339_v2 = vadd.f32 %v338_v42, %v247_v61 }
 0x101   :  { %393 = vst [vmem:[%s905_s3 + $0xa8] sm:$0xff] %v507_v1  ;;  %508 = vtanh.f32 %v345_v0 }
 0x102   :  { %510 = vtanh.f32 %v339_v2 }
 0x107   :  { %v509_v8 = vpop.eup %508 }
 0x108   :  { %v511_v22 = vpop.eup %510  ;;  %396 = vst [vmem:[%s905_s3 + $0xc0] sm:$0xff] %v509_v8 }
 0x109   :  { %394 = vst [vmem:[%s905_s3 + $0xb0] sm:$0xff] %v511_v22 }

// kernel: lenet5_forward.5
= control target key start
LH: loop header
LB: loop body
LE: loop exit
PB: predicated region body
PF: predicated region fallthrough
CT: control target
= control target key end

     0   :  { %s631_s0 = inlined_call_operand.vmem [shape: f32[2,400], index: 0, kind: input, shape index: {}]   ;;  %s632_s1 = inlined_call_operand.vmem [shape: f32[400,128], index: 1, kind: input, shape index: {}]   ;;  %s633_s2 = inlined_call_operand.vmem [shape: f32[1,128], index: 2, kind: input, shape index: {}]   ;;  %s634_s3 = inlined_call_operand.vmem [shape: f32[128,128], index: 3, kind: input, shape index: {}]   ;;  %s635_s4 = inlined_call_operand.vmem [shape: f32[1,128], index: 4, kind: input, shape index: {}]   ;;  %s636_s5 = inlined_call_operand.vmem [shape: f32[128,128], index: 5, kind: input, shape index: {}]   ;;  %s637_s6 = inlined_call_operand.vmem [shape: f32[1,128], index: 6, kind: input, shape index: {}]   ;;  %s638_s7 = inlined_call_operand.hbm [shape: f32[2,128], index: 7, kind: output, shape index: {}]  }
   0x1   :  { %v75_v0 = vld [vmem:[%s632_s1 + $0x178] sm:$0xff]  ;;  %v74_v2 = vld [vmem:[%s632_s1 + $0x170] sm:$0xff]  ;;  %v73_v5 = vld [vmem:[%s632_s1 + $0x168] sm:$0xff] }
   0x2   :  { %v43_v1 = vld [vmem:[%s632_s1 + $0x78] sm:$0xff]  ;;  %134 = vmatpush.msra.mxu2 %v75_v0  ;;  %v42_v3 = vld [vmem:[%s632_s1 + $0x70] sm:$0xff]  ;;  %v41_v6 = vld [vmem:[%s632_s1 + $0x68] sm:$0xff] }
   0x3   :  { %94 = vmatpush.msra.mxu0 %v43_v1  ;;  %v59_v4 = vld [vmem:[%s632_s1 + $0xf8] sm:$0xff]  ;;  %v58_v7 = vld [vmem:[%s632_s1 + $0xf0] sm:$0xff]  ;;  %v57_v8 = vld [vmem:[%s632_s1 + $0xe8] sm:$0xff] }
   0x4   :  { %114 = vmatpush.msra.mxu1 %v59_v4  ;;  %135 = vmatpush.msra.mxu2 %v74_v2  ;;  %v72_v9 = vld [vmem:[%s632_s1 + $0x160] sm:$0xff]  ;;  %v71_v12 = vld [vmem:[%s632_s1 + $0x158] sm:$0xff]  ;;  %v70_v15 = vld [vmem:[%s632_s1 + $0x150] sm:$0xff] }
   0x5   :  { %95 = vmatpush.msra.mxu0 %v42_v3  ;;  %v40_v10 = vld [vmem:[%s632_s1 + $0x60] sm:$0xff]  ;;  %v39_v13 = vld [vmem:[%s632_s1 + $0x58] sm:$0xff]  ;;  %v38_v16 = vld [vmem:[%s632_s1 + $0x50] sm:$0xff] }
   0x6   :  { %115 = vmatpush.msra.mxu1 %v58_v7  ;;  %136 = vmatpush.msra.mxu2 %v73_v5  ;;  %v56_v11 = vld [vmem:[%s632_s1 + $0xe0] sm:$0xff]  ;;  %v55_v14 = vld [vmem:[%s632_s1 + $0xd8] sm:$0xff]  ;;  %v54_v17 = vld [vmem:[%s632_s1 + $0xd0] sm:$0xff] }
   0x7   :  { %96 = vmatpush.msra.mxu0 %v41_v6  ;;  %v69_v18 = vld [vmem:[%s632_s1 + $0x148] sm:$0xff]  ;;  %v68_v21 = vld [vmem:[%s632_s1 + $0x140] sm:$0xff]  ;;  %v67_v24 = vld [vmem:[%s632_s1 + $0x138] sm:$0xff] }
   0x8   :  { %116 = vmatpush.msra.mxu1 %v57_v8  ;;  %137 = vmatpush.msra.mxu2 %v72_v9  ;;  %v37_v19 = vld [vmem:[%s632_s1 + $0x48] sm:$0xff]  ;;  %v36_v22 = vld [vmem:[%s632_s1 + $0x40] sm:$0xff]  ;;  %v35_v25 = vld [vmem:[%s632_s1 + $0x38] sm:$0xff] }
   0x9   :  { %97 = vmatpush.msra.mxu0 %v40_v10  ;;  %v53_v20 = vld [vmem:[%s632_s1 + $0xc8] sm:$0xff]  ;;  %v52_v23 = vld [vmem:[%s632_s1 + $0xc0] sm:$0xff]  ;;  %v51_v26 = vld [vmem:[%s632_s1 + $0xb8] sm:$0xff] }
   0xa   :  { %117 = vmatpush.msra.mxu1 %v56_v11  ;;  %138 = vmatpush.msra.mxu2 %v71_v12  ;;  %v77_v27 = vld [vmem:[%s632_s1 + $0x188] sm:$0xff]  ;;  %v27_v28 = vld [vmem:[%s631_s0] sm:$0xff]  ;;  %v66_v29 = vld [vmem:[%s632_s1 + $0x130] sm:$0xff] }
   0xb   :  { %98 = vmatpush.msra.mxu0 %v39_v13  ;;  %v34_v30 = vld [vmem:[%s632_s1 + $0x30] sm:$0xff]  ;;  %168 = vmatpush.msra.mxu3 %v77_v27  ;;  %83 = vst [vmem:[#allocation1] ss:$4 sm:$0xff] %v27_v28  ;;  %v76_v31 = vld [vmem:[%s632_s1 + $0x180] sm:$0xff]  ;;  %v190_v33 = vld [vmem:[%s634_s3 + $0x78] sm:$0xff] }
   0xc   :  { %118 = vmatpush.msra.mxu1 %v55_v14  ;;  %139 = vmatpush.msra.mxu2 %v70_v15  ;;  %v50_v32 = vld [vmem:[%s632_s1 + $0xb0] sm:$0xff]  ;;  %v65_v34 = vld [vmem:[%s632_s1 + $0x128] sm:$0xff]  ;;  %v64_v36 = vld [vmem:[%s632_s1 + $0x120] sm:$0xff] }
   0xd   :  { %99 = vmatpush.msra.mxu0 %v38_v16  ;;  %v33_v35 = vld [vmem:[%s632_s1 + $0x28] sm:$0xff]  ;;  %169 = vmatpush.msra.mxu3 %v76_v31  ;;  %v189_v38 = vld [vmem:[%s634_s3 + $0x70] sm:$0xff]  ;;  %v32_v39 = vld [vmem:[%s632_s1 + $0x20] sm:$0xff] }
   0xe   :  { %119 = vmatpush.msra.mxu1 %v54_v17  ;;  %140 = vmatpush.msra.mxu2 %v69_v18  ;;  %v49_v37 = vld [vmem:[%s632_s1 + $0xa8] sm:$0xff]  ;;  %v48_v40 = vld [vmem:[%s632_s1 + $0xa0] sm:$0xff] }
   0xf   :  { %100 = vmatpush.msra.mxu0 %v37_v19  ;;  %195 = vmatpush.msrb.mxu3 %v190_v33  ;;  %v188_v41 = vld [vmem:[%s634_s3 + $0x68] sm:$0xff] }
  0x10   :  { %120 = vmatpush.msra.mxu1 %v53_v20  ;;  %141 = vmatpush.msra.mxu2 %v68_v21 }
  0x11   :  { %101 = vmatpush.msra.mxu0 %v36_v22 }
  0x12   :  { %121 = vmatpush.msra.mxu1 %v52_v23  ;;  %142 = vmatpush.msra.mxu2 %v67_v24 }
  0x13   :  { %102 = vmatpush.msra.mxu0 %v35_v25 }
  0x14   :  { %122 = vmatpush.msra.mxu1 %v51_v26  ;;  %143 = vmatpush.msra.mxu2 %v66_v29 }
  0x15   :  { %103 = vmatpush.msra.mxu0 %v34_v30 }
  0x16   :  { %123 = vmatpush.msra.mxu1 %v50_v32  ;;  %144 = vmatpush.msra.mxu2 %v65_v34 }
  0x17   :  { %104 = vmatpush.msra.mxu0 %v33_v35 }
  0x18   :  { %12 = vsyncpa [#allocation3], 0  ;;  %124 = vmatpush.msra.mxu1 %v49_v37  ;;  %v63_v42 = vld [vmem:[%s632_s1 + $0x118] sm:$0xff]  ;;  %196 = vmatpush.msrb.mxu3 %v189_v38  ;;  %vm91_vm0 = vcmask 130048   ;;  %v62_v45 = vld [vmem:[%s632_s1 + $0x110] sm:$0xff]  ;;  %v256_v37 = vlaneseq  ;;  %vm260_vm2 = vcmask 1041408  }
  0x19   :  { %v31_v43 = vld [vmem:[%s632_s1 + $0x18] sm:$0xff]  ;;  %145 = vmatpush.msra.mxu2 %v64_v36  ;;  %105 = vmatpush.msra.mxu0 %v32_v39  ;;  %v30_v46 = vld [vmem:[%s632_s1 + $0x10] sm:$0xff]  ;;  %v187_v49 = vld [vmem:[%s634_s3 + $0x60] sm:$0xff]  ;;  %s281_s25 = sshll.u32 %s638_s7, 4  ;;  %s282_s25 = int_to_ptr.hbm [resolvable:$true] %s281_s25 }
  0x1a   :  { %v47_v44 = vld [vmem:[%s632_s1 + $0x98] sm:$0xff]  ;;  %125 = vmatpush.msra.mxu1 %v48_v40  ;;  %197 = vmatpush.msrb.mxu3 %v188_v41  ;;  %v46_v48 = vld [vmem:[%s632_s1 + $0x90] sm:$0xff]  ;;  %v61_v50 = vld [vmem:[%s632_s1 + $0x108] sm:$0xff]  ;;  %v257_v38 = vand.u32 127, %v256_v37 }
  0x1b   :  { %v87_v47 = vld.sshfl [vmem:[#allocation1 + $0x18] sm:$0xff pattern:$0x73625140]  ;;  %146 = vmatpush.msra.mxu2 %v63_v42  ;;  %106 = vmatpush.msra.mxu0 %v31_v43  ;;  %v29_v51 = vld [vmem:[%s632_s1 + $0x8] sm:$0xff]  ;;  %v60_v54 = vld [vmem:[%s632_s1 + $0x100] sm:$0xff] }
  0x1c   :  { %126 = vmatpush.msra.mxu1 %v47_v44  ;;  %290 = vmatmul.msk.f32.vlgmr.msra.gmra.mxu3 %vm91_vm0, %v87_v47  ;;  %v45_v52 = vld [vmem:[%s632_s1 + $0x88] sm:$0xff]  ;;  %v186_v53 = vld [vmem:[%s634_s3 + $0x58] sm:$0xff]  ;;  %v28_v55 = vld [vmem:[%s632_s1] sm:$0xff]  ;;  %vm258_vm1 = vcmp.lt.s32.totalorder %v257_v38, 10 }
  0x1d   :  { %147 = vmatpush.msra.mxu2 %v62_v45  ;;  %107 = vmatpush.msra.mxu0 %v30_v46  ;;  %v86_v56 = vld.sshfl [vmem:[#allocation1 + $0x10] sm:$0xff pattern:$0x73625140]  ;;  %v84_v57 = vld.sshfl [vmem:[#allocation1] sm:$0xff pattern:$0x73625140] }
  0x1e   :  { %127 = vmatpush.msra.mxu1 %v46_v48  ;;  %198 = vmatpush.msrb.mxu3 %v187_v49  ;;  %v44_v58 = vld [vmem:[%s632_s1 + $0x80] sm:$0xff]  ;;  %v185_v59 = vld [vmem:[%s634_s3 + $0x50] sm:$0xff]  ;;  %v85_v60 = vld.sshfl [vmem:[#allocation1 + $0x8] sm:$0xff pattern:$0x73625140] }
  0x1f   :  { %148 = vmatpush.msra.mxu2 %v61_v50  ;;  %108 = vmatpush.msra.mxu0 %v29_v51  ;;  %v184_v61 = vld [vmem:[%s634_s3 + $0x48] sm:$0xff]  ;;  %v183_v62 = vld [vmem:[%s634_s3 + $0x40] sm:$0xff]  ;;  %v182_v63 = vld [vmem:[%s634_s3 + $0x38] sm:$0xff] }
  0x20   :  { %128 = vmatpush.msra.mxu1 %v45_v52  ;;  %199 = vmatpush.msrb.mxu3 %v186_v53  ;;  %v181_v0 = vld [vmem:[%s634_s3 + $0x30] sm:$0xff]  ;;  %v180_v1 = vld [vmem:[%s634_s3 + $0x28] sm:$0xff]  ;;  %v179_v2 = vld [vmem:[%s634_s3 + $0x20] sm:$0xff] }
  0x21   :  { %149 = vmatpush.msra.mxu2 %v60_v54  ;;  %109 = vmatpush.msra.mxu0 %v28_v55  ;;  %v178_v3 = vld [vmem:[%s634_s3 + $0x18] sm:$0xff]  ;;  %v177_v4 = vld [vmem:[%s634_s3 + $0x10] sm:$0xff]  ;;  %v176_v5 = vld [vmem:[%s634_s3 + $0x8] sm:$0xff] }
  0x22   :  { %150 = vmatmul.f32.vlgmr.msra.gmra.mxu2 %v86_v56  ;;  %110 = vmatmul.f32.vlgmr.msra.gmra.mxu0 %v84_v57  ;;  %v175_v6 = vld [vmem:[%s634_s3] sm:$0xff]  ;;  %v231_v7 = vld [vmem:[%s636_s5 + $0x78] sm:$0xff]  ;;  %v230_v8 = vld [vmem:[%s636_s5 + $0x70] sm:$0xff] }
  0x23   :  { %129 = vmatpush.msra.mxu1 %v44_v58  ;;  %200 = vmatpush.msrb.mxu3 %v185_v59  ;;  %v229_v9 = vld [vmem:[%s636_s5 + $0x68] sm:$0xff]  ;;  %v228_v10 = vld [vmem:[%s636_s5 + $0x60] sm:$0xff]  ;;  %v227_v11 = vld [vmem:[%s636_s5 + $0x58] sm:$0xff] }
  0x24   :  { %130 = vmatmul.f32.vlgmr.msra.gmra.mxu1 %v85_v60  ;;  %236 = vmatpush.msrb.mxu0 %v231_v7  ;;  %v226_v12 = vld [vmem:[%s636_s5 + $0x50] sm:$0xff]  ;;  %v225_v13 = vld [vmem:[%s636_s5 + $0x48] sm:$0xff]  ;;  %v292_v14 = vld [vmem:[%s633_s2] ss:$0 sm:$0xff] }
  0x25   :  { %201 = vmatpush.msrb.mxu3 %v184_v61  ;;  %v224_v15 = vld [vmem:[%s636_s5 + $0x40] sm:$0xff]  ;;  %v223_v17 = vld [vmem:[%s636_s5 + $0x38] sm:$0xff]  ;;  %v222_v20 = vld [vmem:[%s636_s5 + $0x30] sm:$0xff] }
  0x26   :  { %237 = vmatpush.msrb.mxu0 %v230_v8  ;;  %v221_v22 = vld [vmem:[%s636_s5 + $0x28] sm:$0xff]  ;;  %v220_v28 = vld [vmem:[%s636_s5 + $0x20] sm:$0xff]  ;;  %v219_v29 = vld [vmem:[%s636_s5 + $0x18] sm:$0xff] }
  0x27   :  { %202 = vmatpush.msrb.mxu3 %v183_v62  ;;  %v218_v30 = vld [vmem:[%s636_s5 + $0x10] sm:$0xff]  ;;  %v217_v31 = vld [vmem:[%s636_s5 + $0x8] sm:$0xff]  ;;  %v216_v32 = vld [vmem:[%s636_s5] sm:$0xff] }
  0x28   :  { %238 = vmatpush.msrb.mxu0 %v229_v9  ;;  %v293_v33 = vld [vmem:[%s635_s4] ss:$0 sm:$0xff]  ;;  %s329_s4 = smov [#allocation2]  }
  0x29   :  { %203 = vmatpush.msrb.mxu3 %v182_v63  ;;  %v294_v39 = vld [vmem:[%s637_s6] ss:$0 sm:$0xff]  ;;  %s279_s5 = sshll.u32 %s329_s4, 4  ;;  %s280_s5 = int_to_ptr.vmem [resolvable:$true] %s279_s5 }
  0x2a   :  { %239 = vmatpush.msrb.mxu0 %v228_v10 }
  0x2b   :  { %204 = vmatpush.msrb.mxu3 %v181_v0 }
  0x2c   :  { %240 = vmatpush.msrb.mxu0 %v227_v11 }
  0x2d   :  { %205 = vmatpush.msrb.mxu3 %v180_v1 }
  0x2e   :  { %241 = vmatpush.msrb.mxu0 %v226_v12 }
  0x2f   :  { %206 = vmatpush.msrb.mxu3 %v179_v2 }
  0x30   :  { %242 = vmatpush.msrb.mxu0 %v225_v13 }
  0x31   :  { %207 = vmatpush.msrb.mxu3 %v178_v3 }
  0x32   :  { %243 = vmatpush.msrb.mxu0 %v224_v15 }
  0x33   :  { %208 = vmatpush.msrb.mxu3 %v177_v4 }
  0x34   :  { %244 = vmatpush.msrb.mxu0 %v223_v17 }
  0x35   :  { %209 = vmatpush.msrb.mxu3 %v176_v5 }
  0x36   :  { %245 = vmatpush.msrb.mxu0 %v222_v20 }
  0x37   :  { %210 = vmatpush.msrb.mxu3 %v175_v6 }
  0x38   :  { %246 = vmatpush.msrb.mxu0 %v221_v22 }
  0x3a   :  { %247 = vmatpush.msrb.mxu0 %v220_v28 }
  0x3c   :  { %248 = vmatpush.msrb.mxu0 %v219_v29 }
  0x3e   :  { %249 = vmatpush.msrb.mxu0 %v218_v30 }
  0x40   :  { %250 = vmatpush.msrb.mxu0 %v217_v31 }
  0x42   :  { %251 = vmatpush.msrb.mxu0 %v216_v32 }
  0x9f   :  { %v111_v16 = vpop.f32.mrf.mxu0  ;;  %v171_v24 = vpop.f32.mrf.mxu3 }
  0xa0   :  { %v112_v18 = vadd.f32 %v292_v14, %v111_v16 }
  0xa1   :  { %v131_v19 = vpop.f32.mrf.mxu1 }
  0xa2   :  { %v132_v21 = vadd.f32 %v131_v19, %v112_v18 }
  0xa5   :  { %v151_v23 = vpop.f32.mrf.mxu2 }
  0xa6   :  { %v152_v25 = vadd.f32 %v151_v23, %v132_v21 }
  0xa8   :  { %v172_v26 = vadd.f32 %v171_v24, %v152_v25 }
  0xaa   :  { %295 = vtanh.f32 %v172_v26 }
  0xb0   :  { %v296_v27 = vpop.eup %295 }
  0xb1   :  { %211 = vmatmul.f32.vlgmr.msrb.gmra.mxu3 %v296_v27 }
 0x134   :  { %v212_v34 = vpop.f32.mrf.mxu3 }
 0x135   :  { %v213_v35 = vadd.f32 %v293_v33, %v212_v34 }
 0x137   :  { %297 = vtanh.f32 %v213_v35 }
 0x13d   :  { %v298_v36 = vpop.eup %297 }
 0x13e   :  { %252 = vmatmul.f32.vlgmr.msrb.gmra.mxu0 %v298_v36 }
 0x1bb   :  { %v253_v40 = vpop.f32.mrf.mxu0 }
 0x1bc   :  { %v254_v41 = vadd.f32 %v294_v39, %v253_v40 }
 0x1be   :  { %v259_v42 = vsel %vm258_vm1, %v254_v41, -1e+30 }
 0x1bf   :  { %v261_v43 = vsel %vm260_vm2, %v259_v42, -inf }
 0x1c0   :  { %262 = vmax.xlane.f32.xlu0 %v261_v43 }
 0x233   :  { %v263_v44 = vpop.xlane.xlu0 %262 }
 0x234   :  { %v264_v45 = vsub.f32 %v259_v42, %v263_v44 }
 0x236   :  { %v265_v46 = vmul.f32 1.442695, %v264_v45 }
 0x238   :  { %299 = vpow2.f32 %v265_v46 }
 0x23e   :  { %v300_v47 = vpop.eup %299 }
 0x23f   :  { %v267_v48 = vsel %vm258_vm1, %v300_v47, 0.0 }
 0x240   :  { %v268_v49 = vsel %vm260_vm2, %v267_v48, 0.0 }
 0x241   :  { %269 = vadd.xlane.f32.xlu0 %v268_v49 }
 0x2b4   :  { %v270_v50 = vpop.xlane.xlu0 %269 }
 0x2b5   :  { %301 = vrcp.f32 %v270_v50 }
 0x2bb   :  { %v302_v51 = vpop.eup %301 }
 0x2bc   :  { %v272_v52 = vmul.f32 %v302_v51, %v267_v48 }
 0x2be   :  { %273 = vst [vmem:[#allocation2] sm:$0x3] %v272_v52 }
 0x2bf   :  { %284 = dma.vmem_to_hbm [thread:$0]  %s280_s5, 32, %s282_s25, [#allocation3]  }
 0x2c0   :  { %327 = dma.done.wait [#allocation3], 32  }
 0x2c1   :  { %328 = vsyncadd [#allocation3], 4294967264 }
 0x2c2   :  { %289 = vsyncpa [#allocation3], 1 }

</bundles_post_ra>
